<compile_context>
chip_gen: v7x
topology: tpu7x:2x2x1
jax: 0.10.0
libtpu: 0.0.40
codegen_flags: <defaults>
</compile_context>

<pallas_src>
import functools

import jax
import jax.numpy as jnp
from jax.experimental import pallas as pl
from jax.experimental.pallas import tpu as pltpu


def _round_up(v, m):
    return ((v + m - 1) // m) * m


def _vmem_limit_bytes():
    """~75% of per-core VMEM: ~96 MiB on v5e/v6e (128 MiB), ~48 MiB on v7x (64 MiB)."""
    cap = 64 * 1024 * 1024
    try:
        info = pltpu.get_tpu_info()
        cap = int(getattr(info, "vmem_capacity_bytes", cap) or cap)
    except Exception:
        pass
    return min((cap * 3) // 4, 100 * 1024 * 1024)


# ---------------------------------------------------------------------------
# Fused two-phase kernel (one HypergraphConv layer + ReLU)
# ---------------------------------------------------------------------------

def _hconv_fused_kernel(*refs, first_layer):
    """grid = (2, num_node_tiles); phase 0 = scatter, phase 1 = gather.

    phase 0 (reduction over node tiles, accumulators live in VMEM):
        hx_acc[e, :] += sum_j H[j, e] * X[j, :]      (bf16 MXU, f32 accumulate)
        scale[0, e]  += sum_j H[j, e]                (hyperedge degree B; layer 1 only)
      finalize on the last node tile:
        scale[0, e]   = w_e / B_e                    (layer 1 only; reused by layer 2)
        esum          = hx_acc @ Theta               (Theta applied exactly once)

    phase 1 (per node tile):
        D_i   = sum_e H_ie * w_e
        out_i = relu( (1/D_i) * ((H_i,: * scale) @ esum) + bias )
    """
    if first_layer:
        (x_ref, inc_ref, theta_ref, w_ref, bias_ref,
         out_ref, scale_ref, hx_acc, esum_acc) = refs
    else:
        (x_ref, inc_ref, theta_ref, w_ref, bias_ref, scale_ref,
         out_ref, hx_acc, esum_acc) = refs

    phase = pl.program_id(0)
    i = pl.program_id(1)
    last = pl.num_programs(1) - 1

    @pl.when(jnp.logical_and(phase == 0, i == 0))
    def _init():
        hx_acc[...] = jnp.zeros_like(hx_acc)
        if first_layer:
            scale_ref[...] = jnp.zeros_like(scale_ref)

    @pl.when(phase == 0)
    def _scatter():
        h = inc_ref[...]                                        # [TN, Mp] bf16
        # H^T @ X without materializing a transposed incidence copy: contract
        # the shared node-tile axis directly (bf16 MXU, f32 accumulation).
        hx_acc[...] += jax.lax.dot_general(
            h, x_ref[...],
            dimension_numbers=(((0,), (0,)), ((), ())),
            preferred_element_type=jnp.float32)                 # [Mp, Fin_p] f32
        if first_layer:
            # Hyperedge degrees ride a cheap sublane reduction under the MXU work.
            scale_ref[...] += jnp.sum(h.astype(jnp.float32), axis=0, keepdims=True)

    @pl.when(jnp.logical_and(phase == 0, i == last))
    def _finalize():
        if first_layer:
            b = scale_ref[...]
            binv = jnp.where(b > 0.0, pl.reciprocal(b, approx=True), 0.0)
            scale_ref[...] = w_ref[...] * binv                  # s_e = w_e / B_e
        # Theta applied once per layer (hoisted out of the per-tile loop).
        esum_acc[...] = jnp.dot(
            hx_acc[...].astype(jnp.bfloat16), theta_ref[...],
            preferred_element_type=jnp.float32).astype(jnp.bfloat16)

    @pl.when(phase == 1)
    def _gather():
        h = inc_ref[...]                                        # [TN, Mp] bf16
        # Node degrees D_i in f32 (v5e-safe epilogue math).
        d = jnp.sum(h.astype(jnp.float32) * w_ref[...], axis=1, keepdims=True)
        dinv = jnp.where(d > 0.0, pl.reciprocal(d, approx=True), 0.0)
        # Fold s_e = w_e / B_e into the incidence columns (VPU broadcast mul)
        # so the MXU contraction consumes the raw per-hyperedge sums.
        h_s = h * scale_ref[...].astype(jnp.bfloat16)           # [TN, Mp] bf16
        agg = jnp.dot(h_s, esum_acc[...],
                      preferred_element_type=jnp.float32)       # [TN, Fout_p] f32
        out = dinv * agg + bias_ref[...]
        out_ref[...] = jnp.maximum(out, 0.0).astype(out_ref.dtype)   # fused ReLU


# ---------------------------------------------------------------------------
# Per-layer wrapper
# ---------------------------------------------------------------------------

def hypergraph_conv_relu(x, inc, w_row, theta, bias_row, *, tile_n,
                         scale_row=None, out_dtype=jnp.float32):
    """One HypergraphConv layer + fused ReLU as a single two-phase pallas_call.

    All arrays must already be padded: node axis to a multiple of tile_n, the
    hyperedge axis and both feature axes to multiples of 128.

    Returns (out, scale_row) where scale_row[0, e] = w_e / B_e is computed on the
    first layer and reused by the second (incidence / edge weights are layer-
    invariant).
    """
    n_p, f_in_p = x.shape
    m_p = inc.shape[1]
    f_out_p = theta.shape[1]
    assert n_p % tile_n == 0 and tile_n % 8 == 0
    assert m_p % 128 == 0 and f_in_p % 128 == 0 and f_out_p % 128 == 0
    nt = n_p // tile_n
    first_layer = scale_row is None

    in_specs = [
        # x: streamed over node tiles in phase 0, pinned to block 0 in phase 1.
        pl.BlockSpec((tile_n, f_in_p), lambda p, i: (i * (1 - p), 0)),
        # incidence: streamed over node tiles in both phases.
        pl.BlockSpec((tile_n, m_p), lambda p, i: (i, 0)),
        pl.BlockSpec((f_in_p, f_out_p), lambda p, i: (0, 0)),    # Theta (resident)
        pl.BlockSpec((1, m_p), lambda p, i: (0, 0)),             # edge weights
        pl.BlockSpec((1, f_out_p), lambda p, i: (0, 0)),         # bias
    ]
    operands = [x, inc, theta, w_row, bias_row]

    out_shapes = [jax.ShapeDtypeStruct((n_p, f_out_p), out_dtype)]
    out_specs = [
        # Pinned to block 0 during phase 0 (never flushed), written in phase 1.
        pl.BlockSpec((tile_n, f_out_p), lambda p, i: (i * p, 0)),
    ]
    if first_layer:
        # scale output doubles as the B-degree accumulator (constant block index
        # -> stays VMEM-resident for the whole grid, flushed once at the end).
        out_shapes.append(jax.ShapeDtypeStruct((1, m_p), jnp.float32))
        out_specs.append(pl.BlockSpec((1, m_p), lambda p, i: (0, 0)))
    else:
        in_specs.append(pl.BlockSpec((1, m_p), lambda p, i: (0, 0)))   # reused scale
        operands.append(scale_row)

    call = pl.pallas_call(
        functools.partial(_hconv_fused_kernel, first_layer=first_layer),
        out_shape=tuple(out_shapes) if first_layer else out_shapes[0],
        grid_spec=pltpu.PrefetchScalarGridSpec(
            num_scalar_prefetch=0,
            grid=(2, nt),
            in_specs=in_specs,
            out_specs=tuple(out_specs) if first_layer else out_specs[0],
            scratch_shapes=[
                pltpu.VMEM((m_p, f_in_p), jnp.float32),     # H^T X accumulator
                pltpu.VMEM((m_p, f_out_p), jnp.bfloat16),   # (H^T X) Theta
            ]),
        compiler_params=pltpu.CompilerParams(
            # Phase axis is sequential and the node axis is a reduction in
            # phase 0, so both are "arbitrary".
            # TODO(synk): on v7x, split the phase-0 reduction across the two
            # TensorCores (leading size-2 'parallel' axis with partial esums).
            dimension_semantics=("arbitrary", "arbitrary"),
            vmem_limit_bytes=_vmem_limit_bytes()),
    )
    res = call(*operands)
    if first_layer:
        out, scale_row = res
    else:
        out = res
    return out, scale_row


# ---------------------------------------------------------------------------
# Full-forward wrapper (padding / dtype plumbing, plain-JAX glue only)
# ---------------------------------------------------------------------------

def _pad2(a, rows, cols, dtype):
    out = jnp.zeros((rows, cols), dtype)
    return out.at[:a.shape[0], :a.shape[1]].set(a.astype(dtype))


def build_incidence(edge_index, num_nodes_padded, num_edges_padded,
                    dtype=jnp.bfloat16):
    """COO (node, hyperedge) pairs -> dense padded incidence [N_p, M_p]."""
    # TODO(synk): for realistic (sparse) hypergraphs replace the dense incidence
    # with a CSR/segment layout + PrefetchScalarGridSpec-driven index maps so
    # only nonzero node x hyperedge blocks are DMA'd.
    inc = jnp.zeros((num_nodes_padded, num_edges_padded), dtype)
    return inc.at[edge_index[0], edge_index[1]].set(1.0)


def gnn_lep_forward(x, edge_index, edge_weight, batch, params, *,
                    num_edges, tile_n=512):
    """GNN_LEP.forward (eval): conv1 -> relu -> dropout -> conv2 -> relu -> dropout.

    `batch` is accepted for signature fidelity but (as in the PyTorch module) unused.
    """
    del batch  # unused by GNN_LEP.forward
    n, f_in = x.shape
    hidden = params["theta1"].shape[1]
    f_out = params["theta2"].shape[1]

    # Lane-dense padding: hyperedge / feature axes -> multiples of 128, node axis
    # -> multiple of tile_n.  Padded node rows have empty incidence so they never
    # contribute; padded hyperedges get B = 0 -> scale 0; padded feature columns
    # have zero Theta / bias so they stay exactly 0.
    tile_n = min(_round_up(tile_n, 32), _round_up(n, 32))
    n_p = _round_up(n, tile_n)
    m_p = _round_up(num_edges, 128)
    f_in_p = _round_up(f_in, 128)
    hid_p = _round_up(hidden, 128)
    f_out_p = _round_up(f_out, 128)

    inc = build_incidence(edge_index, n_p, m_p, dtype=jnp.bfloat16)
    x_p = _pad2(x, n_p, f_in_p, jnp.bfloat16)
    w_row = _pad2(edge_weight.reshape(1, -1), 1, m_p, jnp.float32)
    theta1 = _pad2(params["theta1"], f_in_p, hid_p, jnp.bfloat16)
    bias1 = _pad2(params["bias1"], 1, hid_p, jnp.float32)
    theta2 = _pad2(params["theta2"], hid_p, f_out_p, jnp.bfloat16)
    bias2 = _pad2(params["bias2"], 1, f_out_p, jnp.float32)

    # TODO(synk): training-mode dropout(p=0.1) would need pltpu.prng_seed +
    # pltpu.stateful_bernoulli in-kernel; in eval mode dropout is the identity.
    x1, scale = hypergraph_conv_relu(x_p, inc, w_row, theta1, bias1,
                                     tile_n=tile_n, out_dtype=jnp.bfloat16)
    x2, _ = hypergraph_conv_relu(x1, inc, w_row, theta2, bias2,
                                 tile_n=tile_n, scale_row=scale,
                                 out_dtype=jnp.float32)
    return x2[:n, :f_out]


# ---------------------------------------------------------------------------
# Pure-JAX (f32) reference of the module semantics
# ---------------------------------------------------------------------------

def _hconv_ref(x, inc, w, theta, bias_row):
    xt = x @ theta
    bdeg = inc.sum(axis=0)
    binv = jnp.where(bdeg > 0.0, 1.0 / bdeg, 0.0)
    ddeg = inc @ w
    dinv = jnp.where(ddeg > 0.0, 1.0 / ddeg, 0.0)
    e = binv[:, None] * (inc.T @ xt)
    return dinv[:, None] * (inc @ (w[:, None] * e)) + bias_row


def gnn_lep_ref(x, edge_index, edge_weight, params, num_edges):
    inc = jnp.zeros((x.shape[0], num_edges), jnp.float32)
    inc = inc.at[edge_index[0], edge_index[1]].set(1.0)
    x1 = jax.nn.relu(_hconv_ref(x, inc, edge_weight, params["theta1"], params["bias1"]))
    x2 = jax.nn.relu(_hconv_ref(x1, inc, edge_weight, params["theta2"], params["bias2"]))
    return x2


# ---------------------------------------------------------------------------
# Demo
# ---------------------------------------------------------------------------

if __name__ == "__main__":
    key = jax.random.PRNGKey(0)
    num_features, hidden_dim = 16, 32
    num_nodes, num_hedges = 128, 16
    ks = jax.random.split(key, 8)

    x = jax.random.normal(ks[0], (num_nodes, num_features), dtype=jnp.float32)

    # Each node belongs to two distinct hyperedges (deterministic via PRNGKey(0)).
    nodes = jnp.arange(num_nodes, dtype=jnp.int32)
    e1 = jax.random.randint(ks[1], (num_nodes,), 0, num_hedges, dtype=jnp.int32)
    off = jax.random.randint(ks[2], (num_nodes,), 1, num_hedges, dtype=jnp.int32)
    e2 = (e1 + off) % num_hedges
    edge_index = jnp.stack([jnp.concatenate([nodes, nodes]),
                            jnp.concatenate([e1, e2])])
    edge_weight = jax.random.uniform(ks[3], (num_hedges,), dtype=jnp.float32,
                                     minval=0.5, maxval=1.5)
    batch = jnp.zeros((num_nodes,), dtype=jnp.int32)  # unused by GNN_LEP.forward

    def glorot(k, fan_in, fan_out):
        lim = (6.0 / (fan_in + fan_out)) ** 0.5
        return jax.random.uniform(k, (fan_in, fan_out), dtype=jnp.float32,
                                  minval=-lim, maxval=lim)

    params = {
        "theta1": glorot(ks[4], num_features, hidden_dim),
        "bias1": 0.05 * jax.random.normal(ks[5], (1, hidden_dim), dtype=jnp.float32),
        "theta2": glorot(ks[6], hidden_dim, 2 * hidden_dim),
        "bias2": 0.05 * jax.random.normal(ks[7], (1, 2 * hidden_dim), dtype=jnp.float32),
    }

    out = gnn_lep_forward(x, edge_index, edge_weight, batch, params,
                          num_edges=num_hedges)
    out = jax.block_until_ready(out)

    ref = gnn_lep_ref(x, edge_index, edge_weight, params, num_hedges)
    assert out.shape == (num_nodes, 2 * hidden_dim)
    # Streamed operands are bf16 (with f32 accumulation), so compare at
    # bf16-level tolerance against the pure-f32 reference.
    assert jnp.allclose(out, ref, atol=3e-2, rtol=3e-2), \
        float(jnp.max(jnp.abs(out - ref)))
    print("KERNEL_OK")
</pallas_src>

<mosaic_0001>
module attributes {stable_mosaic.version = 11 : i64} {
  func.func @_hconv_fused_kernel(%arg0: i32, %arg1: i32, %arg2: memref<128x128xbf16, #tpu.memory_space<vmem>>, %arg3: memref<128x128xbf16, #tpu.memory_space<vmem>>, %arg4: memref<128x128xbf16, #tpu.memory_space<vmem>>, %arg5: memref<1x128xf32, #tpu.memory_space<vmem>>, %arg6: memref<1x128xf32, #tpu.memory_space<vmem>>, %arg7: memref<128x128xbf16, #tpu.memory_space<vmem>>, %arg8: memref<1x128xf32, #tpu.memory_space<vmem>>, %arg9: memref<128x128xf32, #tpu.memory_space<vmem>>, %arg10: memref<128x128xbf16, #tpu.memory_space<vmem>>) attributes {dimension_semantics = [#tpu.dimension_semantics<arbitrary>, #tpu.dimension_semantics<arbitrary>], iteration_bounds = array<i64: 2, 1>, scalar_prefetch = 0 : i64, scratch_operands = 2 : i64, tpu.core_type = #tpu.core_type<tc>, window_params = [{transform_indices = @transform_0, window_bounds = array<i64: 128, 128>}, {transform_indices = @transform_1, window_bounds = array<i64: 128, 128>}, {pipeline_mode = #tpu.pipeline_mode<synchronous>, transform_indices = @transform_2, window_bounds = array<i64: 128, 128>}, {pipeline_mode = #tpu.pipeline_mode<synchronous>, transform_indices = @transform_3, window_bounds = array<i64: 1, 128>}, {pipeline_mode = #tpu.pipeline_mode<synchronous>, transform_indices = @transform_4, window_bounds = array<i64: 1, 128>}, {transform_indices = @transform_5, window_bounds = array<i64: 128, 128>}, {pipeline_mode = #tpu.pipeline_mode<synchronous>, transform_indices = @transform_6, window_bounds = array<i64: 1, 128>}]} {
    %c0_i32 = arith.constant 0 : i32
    %0 = arith.cmpi eq, %arg0, %c0_i32 : i32
    %c0_i32_0 = arith.constant 0 : i32
    %1 = arith.cmpi eq, %arg1, %c0_i32_0 : i32
    %2 = arith.andi %0, %1 : i1
    %3 = arith.extui %2 : i1 to i32
    %c0_i32_1 = arith.constant 0 : i32
    %4 = arith.cmpi ne, %3, %c0_i32_1 : i32
    scf.if %4 {
      %cst = arith.constant 0.000000e+00 : f32
      %16 = vector.broadcast %cst : f32 to vector<128x128xf32>
      %c0 = arith.constant 0 : index
      %c0_8 = arith.constant 0 : index
      %17 = vector.load %arg9[%c0, %c0_8] : memref<128x128xf32, #tpu.memory_space<vmem>>, vector<128x128xf32>
      tpu.vector_store %arg9[%c0, %c0_8], %16 {strides = array<i32>} : memref<128x128xf32, #tpu.memory_space<vmem>>, vector<128x128xf32>,
      %cst_9 = arith.constant 0.000000e+00 : f32
      %18 = vector.broadcast %cst_9 : f32 to vector<1x128xf32>
      %c0_10 = arith.constant 0 : index
      %c0_11 = arith.constant 0 : index
      %19 = vector.load %arg8[%c0_10, %c0_11] : memref<1x128xf32, #tpu.memory_space<vmem>>, vector<1x128xf32>
      tpu.vector_store %arg8[%c0_10, %c0_11], %18 {strides = array<i32>} : memref<1x128xf32, #tpu.memory_space<vmem>>, vector<1x128xf32>,
    } else {
    }
    %c0_i32_2 = arith.constant 0 : i32
    %5 = arith.cmpi eq, %arg0, %c0_i32_2 : i32
    %6 = arith.extui %5 : i1 to i32
    %c0_i32_3 = arith.constant 0 : i32
    %7 = arith.cmpi ne, %6, %c0_i32_3 : i32
    scf.if %7 {
      %c0 = arith.constant 0 : index
      %c0_8 = arith.constant 0 : index
      %16 = vector.load %arg3[%c0, %c0_8] : memref<128x128xbf16, #tpu.memory_space<vmem>>, vector<128x128xbf16>
      %c0_9 = arith.constant 0 : index
      %c0_10 = arith.constant 0 : index
      %17 = vector.load %arg9[%c0_9, %c0_10] : memref<128x128xf32, #tpu.memory_space<vmem>>, vector<128x128xf32>
      %c0_11 = arith.constant 0 : index
      %c0_12 = arith.constant 0 : index
      %18 = vector.load %arg2[%c0_11, %c0_12] : memref<128x128xbf16, #tpu.memory_space<vmem>>, vector<128x128xbf16>
      %cst = arith.constant dense<0.000000e+00> : vector<128x128xf32>
      %19 = tpu.matmul %16, %18, %cst {dimension_numbers = #tpu.dot_dimension_numbers<[0], [0], [1], [1], [0, 1, 1, 1], [], []>} : vector<128x128xbf16>, vector<128x128xbf16>, vector<128x128xf32> -> vector<128x128xf32>
      %20 = arith.addf %17, %19 : vector<128x128xf32>
      %c0_13 = arith.constant 0 : index
      %c0_14 = arith.constant 0 : index
      %21 = vector.load %arg9[%c0_13, %c0_14] : memref<128x128xf32, #tpu.memory_space<vmem>>, vector<128x128xf32>
      tpu.vector_store %arg9[%c0_13, %c0_14], %20 {strides = array<i32>} : memref<128x128xf32, #tpu.memory_space<vmem>>, vector<128x128xf32>,
      %c0_15 = arith.constant 0 : index
      %c0_16 = arith.constant 0 : index
      %22 = vector.load %arg8[%c0_15, %c0_16] : memref<1x128xf32, #tpu.memory_space<vmem>>, vector<1x128xf32>
      %23 = arith.extf %16 : vector<128x128xbf16> to vector<128x128xf32>
      %cst_17 = arith.constant dense<0.000000e+00> : vector<128xf32>
      %24 = vector.multi_reduction <add>, %23, %cst_17 [0] : vector<128x128xf32> to vector<128xf32>
      %25 = vector.shape_cast %24 : vector<128xf32> to vector<1x128xf32>
      %26 = arith.addf %22, %25 : vector<1x128xf32>
      %c0_18 = arith.constant 0 : index
      %c0_19 = arith.constant 0 : index
      %27 = vector.load %arg8[%c0_18, %c0_19] : memref<1x128xf32, #tpu.memory_space<vmem>>, vector<1x128xf32>
      tpu.vector_store %arg8[%c0_18, %c0_19], %26 {strides = array<i32>} : memref<1x128xf32, #tpu.memory_space<vmem>>, vector<1x128xf32>,
    } else {
    }
    %c0_i32_4 = arith.constant 0 : i32
    %8 = arith.cmpi eq, %arg0, %c0_i32_4 : i32
    %c0_i32_5 = arith.constant 0 : i32
    %9 = arith.cmpi eq, %arg1, %c0_i32_5 : i32
    %10 = arith.andi %8, %9 : i1
    %11 = arith.extui %10 : i1 to i32
    %c0_i32_6 = arith.constant 0 : i32
    %12 = arith.cmpi ne, %11, %c0_i32_6 : i32
    scf.if %12 {
      %c0 = arith.constant 0 : index
      %c0_8 = arith.constant 0 : index
      %16 = vector.load %arg8[%c0, %c0_8] : memref<1x128xf32, #tpu.memory_space<vmem>>, vector<1x128xf32>
      %cst = arith.constant 0.000000e+00 : f32
      %17 = vector.broadcast %cst : f32 to vector<1x128xf32>
      %18 = arith.cmpf ogt, %16, %17 : vector<1x128xf32>
      %19 = tpu.reciprocal %16 {approx = true} : vector<1x128xf32> -> vector<1x128xf32>
      %cst_9 = arith.constant 0.000000e+00 : f32
      %20 = vector.broadcast %cst_9 : f32 to vector<1x128xf32>
      %21 = arith.select %18, %19, %20 : vector<1x128xi1>, vector<1x128xf32>
      %c0_10 = arith.constant 0 : index
      %c0_11 = arith.constant 0 : index
      %22 = vector.load %arg5[%c0_10, %c0_11] : memref<1x128xf32, #tpu.memory_space<vmem>>, vector<1x128xf32>
      %23 = arith.mulf %22, %21 : vector<1x128xf32>
      %c0_12 = arith.constant 0 : index
      %c0_13 = arith.constant 0 : index
      %24 = vector.load %arg8[%c0_12, %c0_13] : memref<1x128xf32, #tpu.memory_space<vmem>>, vector<1x128xf32>
      tpu.vector_store %arg8[%c0_12, %c0_13], %23 {strides = array<i32>} : memref<1x128xf32, #tpu.memory_space<vmem>>, vector<1x128xf32>,
      %c0_14 = arith.constant 0 : index
      %c0_15 = arith.constant 0 : index
      %25 = vector.load %arg9[%c0_14, %c0_15] : memref<128x128xf32, #tpu.memory_space<vmem>>, vector<128x128xf32>
      %26 = arith.truncf %25 : vector<128x128xf32> to vector<128x128xbf16>
      %c0_16 = arith.constant 0 : index
      %c0_17 = arith.constant 0 : index
      %27 = vector.load %arg4[%c0_16, %c0_17] : memref<128x128xbf16, #tpu.memory_space<vmem>>, vector<128x128xbf16>
      %cst_18 = arith.constant dense<0.000000e+00> : vector<128x128xf32>
      %28 = tpu.matmul %26, %27, %cst_18 {dimension_numbers = #tpu.dot_dimension_numbers<[1], [0], [0], [1], [0, 0, 1, 1], [], []>} : vector<128x128xbf16>, vector<128x128xbf16>, vector<128x128xf32> -> vector<128x128xf32>
      %29 = arith.truncf %28 : vector<128x128xf32> to vector<128x128xbf16>
      %c0_19 = arith.constant 0 : index
      %c0_20 = arith.constant 0 : index
      %30 = vector.load %arg10[%c0_19, %c0_20] : memref<128x128xbf16, #tpu.memory_space<vmem>>, vector<128x128xbf16>
      tpu.vector_store %arg10[%c0_19, %c0_20], %29 {strides = array<i32>} : memref<128x128xbf16, #tpu.memory_space<vmem>>, vector<128x128xbf16>,
    } else {
    }
    %c1_i32 = arith.constant 1 : i32
    %13 = arith.cmpi eq, %arg0, %c1_i32 : i32
    %14 = arith.extui %13 : i1 to i32
    %c0_i32_7 = arith.constant 0 : i32
    %15 = arith.cmpi ne, %14, %c0_i32_7 : i32
    scf.if %15 {
      %c0 = arith.constant 0 : index
      %c0_8 = arith.constant 0 : index
      %16 = vector.load %arg3[%c0, %c0_8] : memref<128x128xbf16, #tpu.memory_space<vmem>>, vector<128x128xbf16>
      %17 = arith.extf %16 : vector<128x128xbf16> to vector<128x128xf32>
      %c0_9 = arith.constant 0 : index
      %c0_10 = arith.constant 0 : index
      %18 = vector.load %arg5[%c0_9, %c0_10] : memref<1x128xf32, #tpu.memory_space<vmem>>, vector<1x128xf32>
      %19 = vector.broadcast %18 : vector<1x128xf32> to vector<128x128xf32>
      %20 = arith.mulf %17, %19 : vector<128x128xf32>
      %cst = arith.constant dense<0.000000e+00> : vector<128xf32>
      %21 = vector.multi_reduction <add>, %20, %cst [1] : vector<128x128xf32> to vector<128xf32>
      %22 = vector.shape_cast %21 : vector<128xf32> to vector<128x1xf32>
      %cst_11 = arith.constant 0.000000e+00 : f32
      %23 = vector.broadcast %cst_11 : f32 to vector<128x1xf32>
      %24 = arith.cmpf ogt, %22, %23 : vector<128x1xf32>
      %25 = tpu.reciprocal %22 {approx = true} : vector<128x1xf32> -> vector<128x1xf32>
      %cst_12 = arith.constant 0.000000e+00 : f32
      %26 = vector.broadcast %cst_12 : f32 to vector<128x1xf32>
      %27 = arith.select %24, %25, %26 : vector<128x1xi1>, vector<128x1xf32>
      %c0_13 = arith.constant 0 : index
      %c0_14 = arith.constant 0 : index
      %28 = vector.load %arg8[%c0_13, %c0_14] : memref<1x128xf32, #tpu.memory_space<vmem>>, vector<1x128xf32>
      %29 = arith.truncf %28 : vector<1x128xf32> to vector<1x128xbf16>
      %30 = vector.broadcast %29 : vector<1x128xbf16> to vector<128x128xbf16>
      %31 = arith.mulf %16, %30 : vector<128x128xbf16>
      %c0_15 = arith.constant 0 : index
      %c0_16 = arith.constant 0 : index
      %32 = vector.load %arg10[%c0_15, %c0_16] : memref<128x128xbf16, #tpu.memory_space<vmem>>, vector<128x128xbf16>
      %cst_17 = arith.constant dense<0.000000e+00> : vector<128x128xf32>
      %33 = tpu.matmul %31, %32, %cst_17 {dimension_numbers = #tpu.dot_dimension_numbers<[1], [0], [0], [1], [0, 0, 1, 1], [], []>} : vector<128x128xbf16>, vector<128x128xbf16>, vector<128x128xf32> -> vector<128x128xf32>
      %34 = vector.broadcast %27 : vector<128x1xf32> to vector<128x128xf32>
      %35 = arith.mulf %34, %33 : vector<128x128xf32>
      %c0_18 = arith.constant 0 : index
      %c0_19 = arith.constant 0 : index
      %36 = vector.load %arg6[%c0_18, %c0_19] : memref<1x128xf32, #tpu.memory_space<vmem>>, vector<1x128xf32>
      %37 = vector.broadcast %36 : vector<1x128xf32> to vector<128x128xf32>
      %38 = arith.addf %35, %37 : vector<128x128xf32>
      %cst_20 = arith.constant 0.000000e+00 : f32
      %39 = vector.broadcast %cst_20 : f32 to vector<128x128xf32>
      %40 = arith.maximumf %38, %39 : vector<128x128xf32>
      %41 = arith.truncf %40 : vector<128x128xf32> to vector<128x128xbf16>
      %c0_21 = arith.constant 0 : index
      %c0_22 = arith.constant 0 : index
      %42 = vector.load %arg7[%c0_21, %c0_22] : memref<128x128xbf16, #tpu.memory_space<vmem>>, vector<128x128xbf16>
      tpu.vector_store %arg7[%c0_21, %c0_22], %41 {strides = array<i32>} : memref<128x128xbf16, #tpu.memory_space<vmem>>, vector<128x128xbf16>,
    } else {
    }
    return
  }
  func.func @transform_0(%arg0: i32, %arg1: i32) -> (i32, i32) {
    %c1_i32 = arith.constant 1 : i32
    %0 = arith.subi %c1_i32, %arg0 : i32
    %1 = arith.muli %arg1, %0 : i32
    %c0_i32 = arith.constant 0 : i32
    %c0_i32_0 = arith.constant 0 : i32
    return %1, %c0_i32 : i32, i32
  }
  func.func @transform_1(%arg0: i32, %arg1: i32) -> (i32, i32) {
    %c0_i32 = arith.constant 0 : i32
    %c0_i32_0 = arith.constant 0 : i32
    return %arg1, %c0_i32 : i32, i32
  }
  func.func @transform_2(%arg0: i32, %arg1: i32) -> (i32, i32) {
    %c0_i32 = arith.constant 0 : i32
    %c0_i32_0 = arith.constant 0 : i32
    %c0_i32_1 = arith.constant 0 : i32
    return %c0_i32, %c0_i32_0 : i32, i32
  }
  func.func @transform_3(%arg0: i32, %arg1: i32) -> (i32, i32) {
    %c0_i32 = arith.constant 0 : i32
    %c0_i32_0 = arith.constant 0 : i32
    %c0_i32_1 = arith.constant 0 : i32
    return %c0_i32, %c0_i32_0 : i32, i32
  }
  func.func @transform_4(%arg0: i32, %arg1: i32) -> (i32, i32) {
    %c0_i32 = arith.constant 0 : i32
    %c0_i32_0 = arith.constant 0 : i32
    %c0_i32_1 = arith.constant 0 : i32
    return %c0_i32, %c0_i32_0 : i32, i32
  }
  func.func @transform_5(%arg0: i32, %arg1: i32) -> (i32, i32) {
    %0 = arith.muli %arg1, %arg0 : i32
    %c0_i32 = arith.constant 0 : i32
    %c0_i32_0 = arith.constant 0 : i32
    return %0, %c0_i32 : i32, i32
  }
  func.func @transform_6(%arg0: i32, %arg1: i32) -> (i32, i32) {
    %c0_i32 = arith.constant 0 : i32
    %c0_i32_0 = arith.constant 0 : i32
    %c0_i32_1 = arith.constant 0 : i32
    return %c0_i32, %c0_i32_0 : i32, i32
  }
}

</mosaic_0001>

<bundles_post_ra>
// kernel: tpu_custom_call.1
= control target key start
LH: loop header
LB: loop body
LE: loop exit
PB: predicated region body
PF: predicated region fallthrough
CT: control target
= control target key end

     0   :  { %12 = vsyncpa [#allocation5], 0  ;;  %s2526_s0 = inlined_call_operand.hbm [shape: bf16[128,128], index: 0, kind: input, shape index: {}]   ;;  %s2527_s1 = inlined_call_operand.hbm [shape: bf16[128,128], index: 1, kind: input, shape index: {}]   ;;  %s2528_s2 = inlined_call_operand.hbm [shape: bf16[128,128], index: 2, kind: input, shape index: {}]   ;;  %s2529_s3 = inlined_call_operand.vmem [shape: f32[1,128], index: 3, kind: input, shape index: {}]   ;;  %s2530_s4 = inlined_call_operand.vmem [shape: f32[1,128], index: 4, kind: input, shape index: {}]   ;;  %s2531_s5 = inlined_call_operand.hbm [shape: bf16[128,128], index: 5, kind: output, shape index: {0}]   ;;  %s2532_s6 = inlined_call_operand.hbm [shape: f32[1,128], index: 6, kind: output, shape index: {1}]  }
   0x1   :  { %14 = vsyncpa [#allocation5 + $0x1], 0 }
   0x2   :  { %15 = vsyncpa [#allocation8], 0 }
   0x3   :  { %16 = vsyncpa [#allocation6], 0 }
   0x4   :  { %18 = vsyncpa [#allocation6 + $0x1], 0 }
   0x5   :  { %19 = vsyncpa [#allocation12], 0  ;;  %s2188_s21 = smov 0   ;;  %s2190_s22 = smov 0  }
   0x6   :  { %s2192_s23 = smov 0  }
   0x7 LB: > { %s1493_s24 = sadd.s32 4294967295, %s2141_s23   ;;  %s1494_s25 = sadd.s32 4294967294, %s2141_s23   ;;  %s2141_s23 = sphi %s2192_s23, %s25_s23   ;;  %s2137_s22 = sphi %s2190_s22, %s2547_s22   ;;  %s2133_s21 = sphi %s2188_s21, %s2546_s21  }
   0x8   : > { %s37_s26 = sadd.s32 1, %s2137_s22  ;;  %p1495_p0 = scmp.ge.s32.totalorder %s2141_s23, 1 }
   0x9   : > { %p39_p1 = scmp.ge.s32.totalorder %s37_s26, 2  ;;  %p210_p2 = scmp.lt.s32.totalorder %s2141_s23, 3 }
   0xa   : > { %p2210_p3 = scmp.eq.s32.totalorder %s1493_s24, 0  ;;  %s2143_s29 = smov [#allocation7]  }
   0xb   : > { %s2549_s26 = smov (%p39_p1, %s37_s26), 0  ;;  %p2216_p4 = pnand %p1495_p0, %p210_p2 }
   0xc   : > { %s2536_s27 = scalar_select %p2210_p3, 1, 0 }
   0xd   : > { %s2537_s28 = scalar_select %p2216_p4, 1, 0 }
   0xe   : > { %s225_s30 = sshll.u32 %s2143_s29, 4  ;;  %p1840_p5 = pneg %p2216_p4  ;;  %s226_s30 = int_to_ptr.vmem [resolvable:$true] %s225_s30 }
   0xf   : > { %s2144_s8 = smov [#allocation9]   ;;  %s1967_s12 = scalar_lea.hbm %s2527_s1, 1024 }
  0x10   : > { %p2225_p7 = pnand %p2210_p3, %p1840_p5  ;;  %s238_s9 = sshll.u32 %s2144_s8, 4  ;;  %s239_s9 = int_to_ptr.vmem [resolvable:$true] %s238_s9 }
  0x11   : > { %p1968_p9 = scmp.ne.s32.totalorder %s2527_s1, %s1967_s12  ;;  %p1974_p13 = scmp.lt.u32.totalorder %s1967_s12, %s2527_s1 }
  0x12   : > { %p1969_p10 = pneg %p2225_p7 }
  0x14   : > { %p1970_p11 = pnand %p1969_p10, %p1968_p9 }
  0x16   : > { %p1971_p12 = pneg %p1970_p11 }
  0x18   : > { %p1976_p0 = pnand %p1974_p13, %p1971_p12 }
  0x1a   : > { %1979 = shalt.err (!%p1976_p0)
}
  0x1b   : > { %s1980_s17 = scalar_lea.vmem %s226_s30, 1024  ;;  %p1988_p6 = scmp.lt.s32.totalorder %s226_s30, %s226_s30 }
  0x1c   : > { %p1981_p1 = scmp.ne.s32.totalorder %s226_s30, %s1980_s17  ;;  %p1989_p8 = scmp.lt.s32.totalorder %s1980_s17, %s1980_s17 }
  0x1e   : > { %p1983_p2 = pnand %p1981_p1, %p1969_p10  ;;  %p1990_p3 = por %p1989_p8, %p1988_p6 }
  0x20   : > { %p1984_p5 = pneg %p1983_p2 }
  0x22   : > { %p1991_p4 = pnand %p1990_p3, %p1984_p5 }
  0x24   : > { %1994 = shalt.err (!%p1991_p4)
}
  0x25   : > { %s2145_s18 = smov 64   ;;  %s2146_s19 = smov 4  }
  0x26   : > { %1843 = dma.hbm_to_vmem [thread:$0]  (!%p2225_p7), %s2527_s1, 1024, %s226_s30, [#allocation8], %s2145_s18, %s2145_s18, %s2146_s19  }
  0x27   : > { %s1995_s11 = scalar_lea.hbm %s2528_s2, 1024 }
  0x28   : > { %p1996_p3 = scmp.ne.s32.totalorder %s2528_s2, %s1995_s11  ;;  %p2002_p8 = scmp.lt.u32.totalorder %s1995_s11, %s2528_s2 }
  0x2a   : > { %p1998_p4 = pnand %p1996_p3, %p1969_p10 }
  0x2c   : > { %p1999_p6 = pneg %p1998_p4 }
  0x2e   : > { %p2004_p11 = pnand %p2002_p8, %p1999_p6 }
  0x30   : > { %2007 = shalt.err (!%p2004_p11)
}
  0x31   : > { %s2008_s30 = scalar_lea.vmem %s239_s9, 1024  ;;  %p2016_p1 = scmp.lt.s32.totalorder %s239_s9, %s239_s9 }
  0x32   : > { %p2009_p12 = scmp.ne.s32.totalorder %s239_s9, %s2008_s30  ;;  %p2017_p2 = scmp.lt.s32.totalorder %s2008_s30, %s2008_s30 }
  0x34   : > { %p2011_p13 = pnand %p2009_p12, %p1969_p10  ;;  %p2018_p5 = por %p2017_p2, %p2016_p1 }
  0x36   : > { %p2012_p0 = pneg %p2011_p13 }
  0x38   : > { %p2019_p9 = pnand %p2018_p5, %p2012_p0 }
  0x3a   : > { %2022 = shalt.err (!%p2019_p9)
}
  0x3b   : > { %1846 = dma.hbm_to_vmem [thread:$0]  (!%p2225_p7), %s2528_s2, 1024, %s239_s9, [#allocation8], %s2145_s18, %s2145_s18, %s2146_s19  }
  0x3c   : > { %p2539_p3 = scmp.lt.s32.totalorder %s2141_s23, 2  ;;  %p2540_p4 = scmp.eq.s32.totalorder %s2141_s23, 0 }
  0x3d   : > { %s2147_s29 = smov [#allocation4]   ;;  %s2023_s11 = scalar_lea.hbm %s2526_s0, 1024 }
  0x3e   : > { %p2283_p10 = pnand %p2540_p4, %p2539_p3  ;;  %s271_s8 = sshll.u32 %s2147_s29, 4  ;;  %s272_s8 = int_to_ptr.vmem [resolvable:$true] %s271_s8 }
  0x3f   : > { %p2024_p9 = scmp.ne.s32.totalorder %s2526_s0, %s2023_s11  ;;  %p2030_p11 = scmp.lt.u32.totalorder %s2023_s11, %s2526_s0 }
  0x40   : > { %p2025_p7 = pneg %p2283_p10 }
  0x42   : > { %p2026_p6 = pnand %p2025_p7, %p2024_p9 }
  0x44   : > { %p2027_p8 = pneg %p2026_p6 }
  0x46   : > { %p2032_p12 = pnand %p2030_p11, %p2027_p8 }
  0x48   : > { %2035 = shalt.err (!%p2032_p12)
}
  0x49   : > { %s2036_s15 = scalar_lea.vmem %s272_s8, 1024  ;;  %s2043_s30 = scalar_lea.vmem %s272_s8, 2048 }
  0x4a   : > { %p2037_p13 = scmp.ne.s32.totalorder %s272_s8, %s2036_s15  ;;  %p2044_p2 = scmp.lt.s32.totalorder %s272_s8, %s272_s8 }
  0x4b   : > { %p2045_p5 = scmp.lt.s32.totalorder %s2043_s30, %s2036_s15 }
  0x4c   : > { %p2039_p0 = pnand %p2037_p13, %p2025_p7 }
  0x4d   : > { %p2046_p3 = por %p2045_p5, %p2044_p2 }
  0x4e   : > { %p2040_p1 = pneg %p2039_p0 }
  0x50   : > { %p2047_p4 = pnand %p2046_p3, %p2040_p1 }
  0x52   : > { %2050 = shalt.err (!%p2047_p4)
}
  0x53   : > { %1850 = dma.hbm_to_vmem [thread:$0]  (!%p2283_p10), %s2526_s0, 1024, %s272_s8, [#allocation5], %s2145_s18, %s2145_s18, %s2146_s19  }
  0x54   : > { %p2542_p9 = scmp.ne.s32.totalorder %s2537_s28, 0 }
  0x55   : > { %p2543_p7 = scmp.ne.s32.totalorder (!%p2542_p9), %s2536_s27, 0 }
  0x56   : > { %283 = sbr.rel (%p2542_p9) target bundleno = 1034 (0x40a), region = 40 }
  0x5d   : > { %2116 = dma.done.wait (%p2543_p7), [#allocation5], 1024  }
  0x5e   : > { %2118 = vsyncadd (%p2543_p7), [#allocation5], 4294966272 }
  0x5f   : > { %2120 = dma.done.wait (%p2543_p7), [#allocation8], 2048  }
  0x60   : > { %2122 = vsyncadd (%p2543_p7), [#allocation8], 4294965248  ;;  %p333_p6 = scmp.eq.s32.totalorder %s2133_s21, 0 }
  0x61   : > { %v2148_v0 = vmov (%p333_p6), 0.0  }
  0x62   : > { %338 = sbr.rel (!%p333_p6) target bundleno = 107 (0x6b), region = 56  ;;  %339 = vst [vmem:[#allocation2] sm:$0xff] (%p333_p6), %v2148_v0  ;;  %340 = vst [vmem:[#allocation2 + $0x8] sm:$0xff] (%p333_p6), %v2148_v0 }
  0x63   : > { %341 = vst [vmem:[#allocation2 + $0x10] sm:$0xff] (%p333_p6), %v2148_v0  ;;  %342 = vst [vmem:[#allocation2 + $0x18] sm:$0xff] (%p333_p6), %v2148_v0 }
  0x64   : > { %343 = vst [vmem:[#allocation2 + $0x20] sm:$0xff] (%p333_p6), %v2148_v0  ;;  %344 = vst [vmem:[#allocation2 + $0x28] sm:$0xff] (%p333_p6), %v2148_v0 }
  0x65   : > { %345 = vst [vmem:[#allocation2 + $0x30] sm:$0xff] (%p333_p6), %v2148_v0  ;;  %346 = vst [vmem:[#allocation2 + $0x38] sm:$0xff] (%p333_p6), %v2148_v0 }
  0x66   : > { %347 = vst [vmem:[#allocation2 + $0x40] sm:$0xff] (%p333_p6), %v2148_v0  ;;  %348 = vst [vmem:[#allocation2 + $0x48] sm:$0xff] (%p333_p6), %v2148_v0 }
  0x67   : > { %349 = vst [vmem:[#allocation2 + $0x50] sm:$0xff] (%p333_p6), %v2148_v0  ;;  %350 = vst [vmem:[#allocation2 + $0x58] sm:$0xff] (%p333_p6), %v2148_v0 }
  0x68   : > { %351 = vst [vmem:[#allocation2 + $0x60] sm:$0xff] (%p333_p6), %v2148_v0  ;;  %352 = vst [vmem:[#allocation2 + $0x68] sm:$0xff] (%p333_p6), %v2148_v0 }
  0x69   : > { %353 = vst [vmem:[#allocation2 + $0x70] sm:$0xff] %v2148_v0  ;;  %354 = vst [vmem:[#allocation2 + $0x78] sm:$0xff] %v2148_v0 }
  0x6a   : > { %355 = vst [vmem:[#allocation11] sm:$0x1] %v2148_v0 }
  0x6b PF: > { %p1505_p10 = scmp.ne.s32.totalorder %s2133_s21, 0 }
  0x6c   : > { %v359_v1 = vld [vmem:[#allocation7] sm:$0xff] (!%p1505_p10)   ;;  %v361_v2 = vld [vmem:[#allocation7 + $0x8] sm:$0xff] (!%p1505_p10)   ;;  %v363_v6 = vld [vmem:[#allocation7 + $0x10] sm:$0xff] (!%p1505_p10)  }
  0x6d   : > { %358 = sbr.rel (%p1505_p10) target bundleno = 458 (0x1ca), region = 60  ;;  %v649_v3 = vunpack.c.l.bf16 (!%p1505_p10), %v359_v1  ;;  %v650_v4 = vunpack.c.h.bf16 (!%p1505_p10), %v359_v1  ;;  %v651_v5 = vunpack.c.l.bf16 (!%p1505_p10), %v361_v2  ;;  %455 = vxpose.xlu0.c.b16.start [1/8] (!%p1505_p10), %v359_v1, 128  ;;  %v652_v8 = vunpack.c.h.bf16 (!%p1505_p10), %v361_v2  ;;  %v1909_v9 = vld [vmem:[#allocation4] sm:$0xff] (!%p1505_p10)   ;;  %v1910_v10 = vld [vmem:[#allocation4 + $0x8] sm:$0xff] (!%p1505_p10)   ;;  %v1911_v15 = vld [vmem:[#allocation4 + $0x10] sm:$0xff] (!%p1505_p10)  }
  0x6e   : > { %v653_v12 = vunpack.c.l.bf16 (!%p1505_p10), %v363_v6  ;;  %1676 = vmatprep.subr.bf16.mxu0 (!%p1505_p10), %v1909_v9  ;;  %1772 = vmatprep.subr.bf16.mxu1 (!%p1505_p10), %v1909_v9  ;;  %v654_v14 = vunpack.c.h.bf16 (!%p1505_p10), %v363_v6  ;;  %v365_v16 = vld [vmem:[#allocation7 + $0x18] sm:$0xff] (!%p1505_p10)   ;;  %v367_v22 = vld [vmem:[#allocation7 + $0x20] sm:$0xff] (!%p1505_p10)   ;;  %v369_v28 = vld [vmem:[#allocation7 + $0x28] sm:$0xff] (!%p1505_p10)  }
  0x6f   : > { %v665_v7 = vadd.f32 (!%p1505_p10), %v650_v4, %v649_v3  ;;  %1677 = vmatpush3.bf16.msra.mxu0 (!%p1505_p10), %v1909_v9  ;;  %1780 = vmatpush3.bf16.msra.mxu1 (!%p1505_p10), %v1909_v9  ;;  %v655_v18 = vunpack.c.l.bf16 (!%p1505_p10), %v365_v16  ;;  %v656_v20 = vunpack.c.h.bf16 (!%p1505_p10), %v365_v16  ;;  %v1912_v21 = vld [vmem:[#allocation4 + $0x18] sm:$0xff] (!%p1505_p10)   ;;  %v657_v24 = vunpack.c.l.bf16 (!%p1505_p10), %v367_v22  ;;  %v1913_v27 = vld [vmem:[#allocation4 + $0x20] sm:$0xff] (!%p1505_p10)   ;;  %v1914_v33 = vld [vmem:[#allocation4 + $0x28] sm:$0xff] (!%p1505_p10)  }
  0x70   : > { %1678 = vmatprep.subr.bf16.mxu0 (!%p1505_p10), %v1910_v10  ;;  %1773 = vmatprep.subr.bf16.mxu1 (!%p1505_p10), %v1910_v10  ;;  %v658_v26 = vunpack.c.h.bf16 (!%p1505_p10), %v367_v22  ;;  %v659_v30 = vunpack.c.l.bf16 (!%p1505_p10), %v369_v28  ;;  %v660_v32 = vunpack.c.h.bf16 (!%p1505_p10), %v369_v28  ;;  %v371_v34 = vld [vmem:[#allocation7 + $0x30] sm:$0xff] (!%p1505_p10)   ;;  %v373_v40 = vld [vmem:[#allocation7 + $0x38] sm:$0xff] (!%p1505_p10)   ;;  %v375_v1 = vld [vmem:[#allocation2] sm:$0xff] (!%p1505_p10) }
  0x71   : > { %v666_v11 = vadd.f32 (!%p1505_p10), %v665_v7, %v651_v5  ;;  %456 = vxpose.xlu0.c.b16.cont [2/8] (!%p1505_p10), %v361_v2, 128  ;;  %v661_v36 = vunpack.c.l.bf16 (!%p1505_p10), %v371_v34  ;;  %v662_v38 = vunpack.c.h.bf16 (!%p1505_p10), %v371_v34  ;;  %v1915_v39 = vld [vmem:[#allocation4 + $0x30] sm:$0xff] (!%p1505_p10)   ;;  %v663_v42 = vunpack.c.l.bf16 (!%p1505_p10), %v373_v40  ;;  %v1916_v45 = vld [vmem:[#allocation4 + $0x38] sm:$0xff] (!%p1505_p10)   ;;  %v648_v53 = vld [vmem:[#allocation11] sm:$0x1] (!%p1505_p10) }
  0x72   : > { %v664_v44 = vunpack.c.h.bf16 (!%p1505_p10), %v373_v40  ;;  %v377_v0 = vld [vmem:[#allocation2 + $0x10] sm:$0xff] (!%p1505_p10)  ;;  %v378_v3 = vld [vmem:[#allocation2 + $0x18] sm:$0xff] (!%p1505_p10) }
  0x73   : > { %v667_v13 = vadd.f32 (!%p1505_p10), %v666_v11, %v652_v8  ;;  %1679 = vmatpush3.bf16.msra.mxu0 (!%p1505_p10), %v1910_v10  ;;  %1781 = vmatpush3.bf16.msra.mxu1 (!%p1505_p10), %v1910_v10 }
  0x74   : > { %1680 = vmatprep.subr.bf16.mxu0 %v1911_v15  ;;  %1774 = vmatprep.subr.bf16.mxu1 %v1911_v15 }
  0x75   : > { %v668_v17 = vadd.f32 %v667_v13, %v653_v12  ;;  %457 = vxpose.xlu0.c.b16.cont [3/8] %v363_v6, 128  ;;  %v376_v6 = vld [vmem:[#allocation2 + $0x8] sm:$0xff]  ;;  %v381_v12 = vld [vmem:[#allocation2 + $0x30] sm:$0xff]  ;;  %v379_v13 = vld [vmem:[#allocation2 + $0x20] sm:$0xff] }
  0x77   : > { %v669_v19 = vadd.f32 %v668_v17, %v654_v14  ;;  %1681 = vmatpush3.bf16.msra.mxu0 %v1911_v15  ;;  %1782 = vmatpush3.bf16.msra.mxu1 %v1911_v15  ;;  %v382_v15 = vld [vmem:[#allocation2 + $0x38] sm:$0xff] }
  0x78   : > { %1682 = vmatprep.subr.bf16.mxu0 %v1912_v21  ;;  %1775 = vmatprep.subr.bf16.mxu1 %v1912_v21 }
  0x79   : > { %v670_v23 = vadd.f32 %v669_v19, %v655_v18  ;;  %458 = vxpose.xlu0.c.b16.cont [4/8] %v365_v16, 128  ;;  %v380_v18 = vld [vmem:[#allocation2 + $0x28] sm:$0xff] }
  0x7b   : > { %v671_v25 = vadd.f32 %v670_v23, %v656_v20  ;;  %1683 = vmatpush3.bf16.msra.mxu0 %v1912_v21  ;;  %1783 = vmatpush3.bf16.msra.mxu1 %v1912_v21 }
  0x7c   : > { %1684 = vmatprep.subr.bf16.mxu0 %v1913_v27  ;;  %1776 = vmatprep.subr.bf16.mxu1 %v1913_v27 }
  0x7d   : > { %v672_v29 = vadd.f32 %v671_v25, %v657_v24  ;;  %459 = vxpose.xlu0.c.b16.cont [5/8] %v367_v22, 128  ;;  %v385_v24 = vld [vmem:[#allocation2 + $0x50] sm:$0xff]  ;;  %v383_v25 = vld [vmem:[#allocation2 + $0x40] sm:$0xff] }
  0x7f   : > { %v673_v31 = vadd.f32 %v672_v29, %v658_v26  ;;  %1685 = vmatpush3.bf16.msra.mxu0 %v1913_v27  ;;  %1784 = vmatpush3.bf16.msra.mxu1 %v1913_v27  ;;  %v386_v27 = vld [vmem:[#allocation2 + $0x58] sm:$0xff] }
  0x80   : > { %1686 = vmatprep.subr.bf16.mxu0 %v1914_v33  ;;  %1777 = vmatprep.subr.bf16.mxu1 %v1914_v33 }
  0x81   : > { %v674_v35 = vadd.f32 %v673_v31, %v659_v30  ;;  %460 = vxpose.xlu0.c.b16.cont [6/8] %v369_v28, 128  ;;  %v384_v30 = vld [vmem:[#allocation2 + $0x48] sm:$0xff] }
  0x83   : > { %v675_v37 = vadd.f32 %v674_v35, %v660_v32  ;;  %1687 = vmatpush3.bf16.msra.mxu0 %v1914_v33  ;;  %1785 = vmatpush3.bf16.msra.mxu1 %v1914_v33 }
  0x84   : > { %1688 = vmatprep.subr.bf16.mxu0 %v1915_v39  ;;  %1778 = vmatprep.subr.bf16.mxu1 %v1915_v39 }
  0x85   : > { %v676_v41 = vadd.f32 %v675_v37, %v661_v36  ;;  %461 = vxpose.xlu0.c.b16.cont [7/8] %v371_v34, 128  ;;  %v389_v36 = vld [vmem:[#allocation2 + $0x70] sm:$0xff]  ;;  %v387_v37 = vld [vmem:[#allocation2 + $0x60] sm:$0xff] }
  0x87   : > { %v677_v43 = vadd.f32 %v676_v41, %v662_v38  ;;  %1689 = vmatpush3.bf16.msra.mxu0 %v1915_v39  ;;  %1786 = vmatpush3.bf16.msra.mxu1 %v1915_v39  ;;  %v390_v39 = vld [vmem:[#allocation2 + $0x78] sm:$0xff] }
  0x88   : > { %1690 = vmatprep.subr.bf16.mxu0 %v1916_v45  ;;  %1779 = vmatprep.subr.bf16.mxu1 %v1916_v45 }
  0x89   : > { %v678_v46 = vadd.f32 %v677_v43, %v663_v42  ;;  %462 = vxpose.xlu0.c.b16.end [8/8] %v373_v40, 128  ;;  %v388_v42 = vld [vmem:[#allocation2 + $0x68] sm:$0xff] }
  0x8b   : > { %v679_v47 = vadd.f32 %v678_v46, %v664_v44  ;;  %1691 = vmatpush3.bf16.msra.mxu0 %v1916_v45  ;;  %1787 = vmatpush3.bf16.msra.mxu1 %v1916_v45 }
  0x8d   : > { %v680_v48 = vrot.slane %v679_v47, 4 }
  0x8f   : > { %v681_v49 = vadd.f32 %v680_v48, %v679_v47 }
  0x91   : > { %v682_v50 = vrot.slane %v681_v49, 2 }
  0x93   : > { %v683_v51 = vadd.f32 %v682_v50, %v681_v49 }
  0x95   : > { %v684_v52 = vrot.slane %v683_v51, 1 }
  0x97   : > { %v685_v54 = vadd.f32 %v684_v52, %v683_v51 }
  0x99   : > { %v686_v55 = vadd.f32 %v685_v54, %v648_v53 }
  0x9b   : > { %687 = vst [vmem:[#allocation11] sm:$0x1] %v686_v55 }
  0xd3   : > { %v463_v56 = vpop.trf.xlu0 }
  0xd4   : > { %1692 = vmatprep.mubr.bf16.mxu0 %v463_v56 }
  0xd7   : > { %v464_v57 = vpop.trf.xlu0 }
  0xd8   : > { %1693 = vmatmul.mubr.bf16.vlgmr.msra.gmra.mrb[0].mxu0 %v464_v57 }
  0xdb   : > { %v465_v58 = vpop.trf.xlu0 }
  0xdc   : > { %1696 = vmatprep.mubr.bf16.mxu0 %v465_v58 }
  0xdf   : > { %v466_v59 = vpop.trf.xlu0 }
  0xe0   : > { %1697 = vmatmul.mubr.bf16.gmra.mrb[4].mxu0 %v466_v59 }
  0xe3   : > { %v467_v60 = vpop.trf.xlu0 }
  0xe4   : > { %1700 = vmatprep.mubr.bf16.mxu1 %v467_v60 }
  0xe7   : > { %v468_v61 = vpop.trf.xlu0 }
  0xe8   : > { %1701 = vmatmul.mubr.bf16.vlgmr.msra.gmra.mrb[0].mxu1 %v468_v61 }
  0xeb   : > { %v469_v62 = vpop.trf.xlu0 }
  0xec   : > { %1704 = vmatprep.mubr.bf16.mxu1 %v469_v62 }
  0xef   : > { %v470_v63 = vpop.trf.xlu0 }
  0xf0   : > { %1705 = vmatmul.mubr.bf16.gmra.mrb[4].mxu1 %v470_v63 }
 0x1ab   : > { %v1694_v2 = vpop.f32.mrb[0].mxu0 }
 0x1ac   : > { %v618_v4 = vadd.f32 %v1694_v2, %v377_v0  ;;  %v553_v5 = vpop.f32.mrb[1].mxu0 }
 0x1ad   : > { %v616_v7 = vadd.f32 %v553_v5, %v375_v1  ;;  %v1695_v8 = vpop.f32.mrb[2].mxu0 }
 0x1ae   : > { %634 = vst [vmem:[#allocation2 + $0x10] sm:$0xff] %v618_v4  ;;  %v619_v9 = vadd.f32 %v1695_v8, %v378_v3  ;;  %v556_v10 = vpop.f32.mrb[3].mxu0 }
 0x1af   : > { %632 = vst [vmem:[#allocation2] sm:$0xff] %v616_v7  ;;  %v617_v11 = vadd.f32 %v556_v10, %v376_v6 }
 0x1b0   : > { %635 = vst [vmem:[#allocation2 + $0x18] sm:$0xff] %v619_v9 }
 0x1b1   : > { %633 = vst [vmem:[#allocation2 + $0x8] sm:$0xff] %v617_v11 }
 0x1b3   : > { %v1698_v14 = vpop.f32.mrb[4].mxu0 }
 0x1b4   : > { %v622_v16 = vadd.f32 %v1698_v14, %v381_v12  ;;  %v569_v17 = vpop.f32.mrb[5].mxu0 }
 0x1b5   : > { %v620_v19 = vadd.f32 %v569_v17, %v379_v13  ;;  %v1699_v20 = vpop.f32.mrb[6].mxu0 }
 0x1b6   : > { %638 = vst [vmem:[#allocation2 + $0x30] sm:$0xff] %v622_v16  ;;  %v623_v21 = vadd.f32 %v1699_v20, %v382_v15  ;;  %v572_v22 = vpop.f32.mrb[7].mxu0 }
 0x1b7   : > { %636 = vst [vmem:[#allocation2 + $0x20] sm:$0xff] %v620_v19  ;;  %v621_v23 = vadd.f32 %v572_v22, %v380_v18 }
 0x1b8   : > { %639 = vst [vmem:[#allocation2 + $0x38] sm:$0xff] %v623_v21 }
 0x1b9   : > { %637 = vst [vmem:[#allocation2 + $0x28] sm:$0xff] %v621_v23 }
 0x1bb   : > { %v1702_v26 = vpop.f32.mrb[0].mxu1 }
 0x1bc   : > { %v626_v28 = vadd.f32 %v1702_v26, %v385_v24  ;;  %v585_v29 = vpop.f32.mrb[1].mxu1 }
 0x1bd   : > { %v624_v31 = vadd.f32 %v585_v29, %v383_v25  ;;  %v1703_v32 = vpop.f32.mrb[2].mxu1 }
 0x1be   : > { %642 = vst [vmem:[#allocation2 + $0x50] sm:$0xff] %v626_v28  ;;  %v627_v33 = vadd.f32 %v1703_v32, %v386_v27  ;;  %v588_v34 = vpop.f32.mrb[3].mxu1 }
 0x1bf   : > { %640 = vst [vmem:[#allocation2 + $0x40] sm:$0xff] %v624_v31  ;;  %v625_v35 = vadd.f32 %v588_v34, %v384_v30 }
 0x1c0   : > { %643 = vst [vmem:[#allocation2 + $0x58] sm:$0xff] %v627_v33 }
 0x1c1   : > { %641 = vst [vmem:[#allocation2 + $0x48] sm:$0xff] %v625_v35 }
 0x1c3   : > { %v1706_v38 = vpop.f32.mrb[4].mxu1 }
 0x1c4   : > { %v630_v40 = vadd.f32 %v1706_v38, %v389_v36  ;;  %v601_v41 = vpop.f32.mrb[5].mxu1 }
 0x1c5   : > { %v628_v43 = vadd.f32 %v601_v41, %v387_v37  ;;  %v1707_v44 = vpop.f32.mrb[6].mxu1 }
 0x1c6   : > { %646 = vst [vmem:[#allocation2 + $0x70] sm:$0xff] %v630_v40  ;;  %v631_v45 = vadd.f32 %v1707_v44, %v390_v39  ;;  %v604_v46 = vpop.f32.mrb[7].mxu1 }
 0x1c7   : > { %644 = vst [vmem:[#allocation2 + $0x60] sm:$0xff] %v628_v43  ;;  %v629_v47 = vadd.f32 %v604_v46, %v388_v42 }
 0x1c8   : > { %647 = vst [vmem:[#allocation2 + $0x78] sm:$0xff] %v631_v45 }
 0x1c9   : > { %645 = vst [vmem:[#allocation2 + $0x68] sm:$0xff] %v629_v47 }
 0x1ca PF: > { %689 = sbr.rel (!%p333_p6) target bundleno = 718 (0x2ce), region = 64  ;;  %v690_v48 = vld [vmem:[#allocation11] sm:$0x1] (%p333_p6)  ;;  %v1926_v50 = vld [vmem:[#allocation9 + $0x8] sm:$0xff] (%p333_p6)   ;;  %v1927_v51 = vld [vmem:[#allocation9 + $0x10] sm:$0xff] (%p333_p6)  }
 0x1cb   : > { %1933 = vrcp.f32 (%p333_p6), %v690_v48  ;;  %v1925_v49 = vld [vmem:[#allocation9] sm:$0xff] (%p333_p6)   ;;  %v1928_v52 = vld [vmem:[#allocation9 + $0x18] sm:$0xff] (%p333_p6)   ;;  %vm691_vm0 = vcmp.gt.f32.partialorder (%p333_p6), %v690_v48, 0.0  ;;  %v698_v54 = vld [vmem:[#allocation2 + $0x8] sm:$0xff] (%p333_p6) }
 0x1cc   : > { %1708 = vmatprep.subr.bf16.mxu0 (%p333_p6), %v1925_v49  ;;  %1788 = vmatprep.subr.bf16.mxu1 (%p333_p6), %v1925_v49  ;;  %v697_v53 = vld [vmem:[#allocation2] sm:$0xff] (%p333_p6)  ;;  %v706_v56 = vld [vmem:[#allocation2 + $0x48] sm:$0xff] (%p333_p6)  ;;  %v1931_v1 = vld [vmem:[#allocation9 + $0x30] sm:$0xff] (%p333_p6)  }
 0x1cd   : > { %1709 = vmatpush3.bf16.msra.mxu0 (%p333_p6), %v1925_v49  ;;  %1796 = vmatpush3.bf16.msra.mxu1 (%p333_p6), %v1925_v49  ;;  %v705_v55 = vld [vmem:[#allocation2 + $0x40] sm:$0xff] (%p333_p6)  ;;  %v713_v58 = vpack.c.bf16 (%p333_p6), %v698_v54, %v697_v53  ;;  %v1930_v0 = vld [vmem:[#allocation9 + $0x28] sm:$0xff] (%p333_p6)   ;;  %v1932_v2 = vld [vmem:[#allocation9 + $0x38] sm:$0xff] (%p333_p6)  }
 0x1ce   : > { %1710 = vmatprep.subr.bf16.mxu0 (%p333_p6), %v1926_v50  ;;  %1789 = vmatprep.subr.bf16.mxu1 (%p333_p6), %v1926_v50  ;;  %v694_v57 = vld [vmem:[%s2529_s3] sm:$0x1] (%p333_p6)  ;;  %v717_v59 = vpack.c.bf16 (%p333_p6), %v706_v56, %v705_v55  ;;  %v699_v3 = vld [vmem:[#allocation2 + $0x10] sm:$0xff] (%p333_p6)  ;;  %v700_v4 = vld [vmem:[#allocation2 + $0x18] sm:$0xff] (%p333_p6) }
 0x1cf   : > { %v1929_v63 = vld [vmem:[#allocation9 + $0x20] sm:$0xff] (%p333_p6)   ;;  %1724 = vmatprep.mubr.bf16.mxu0 (%p333_p6), %v713_v58  ;;  %v707_v5 = vld [vmem:[#allocation2 + $0x50] sm:$0xff] (%p333_p6)  ;;  %v708_v6 = vld [vmem:[#allocation2 + $0x58] sm:$0xff] (%p333_p6)  ;;  %v714_v11 = vpack.c.bf16 (%p333_p6), %v700_v4, %v699_v3 }
 0x1d0   : > { %1732 = vmatprep.mubr.bf16.mxu1 (%p333_p6), %v717_v59  ;;  %v701_v7 = vld [vmem:[#allocation2 + $0x20] sm:$0xff] (%p333_p6)  ;;  %v702_v8 = vld [vmem:[#allocation2 + $0x28] sm:$0xff] (%p333_p6)  ;;  %v718_v12 = vpack.c.bf16 (%p333_p6), %v708_v6, %v707_v5  ;;  %v703_v15 = vld [vmem:[#allocation2 + $0x30] sm:$0xff] (%p333_p6) }
 0x1d1   : > { %1711 = vmatpush3.bf16.msra.mxu0 %v1926_v50  ;;  %1797 = vmatpush3.bf16.msra.mxu1 %v1926_v50  ;;  %v709_v9 = vld [vmem:[#allocation2 + $0x60] sm:$0xff]  ;;  %v710_v10 = vld [vmem:[#allocation2 + $0x68] sm:$0xff]  ;;  %v715_v13 = vpack.c.bf16 %v702_v8, %v701_v7  ;;  %v704_v16 = vld [vmem:[#allocation2 + $0x38] sm:$0xff] }
 0x1d2   : > { %1712 = vmatprep.subr.bf16.mxu0 %v1927_v51  ;;  %1790 = vmatprep.subr.bf16.mxu1 %v1927_v51  ;;  %v719_v14 = vpack.c.bf16 %v710_v10, %v709_v9  ;;  %v711_v17 = vld [vmem:[#allocation2 + $0x70] sm:$0xff]  ;;  %v712_v18 = vld [vmem:[#allocation2 + $0x78] sm:$0xff]  ;;  %v716_v19 = vpack.c.bf16 %v704_v16, %v703_v15 }
 0x1d3   : > { %v720_v20 = vpack.c.bf16 %v712_v18, %v711_v17 }
 0x1d5   : > { %v1934_v60 = vpop.eup %1933  ;;  %1713 = vmatpush3.bf16.msra.mxu0 %v1927_v51  ;;  %1798 = vmatpush3.bf16.msra.mxu1 %v1927_v51 }
 0x1d6   : > { %v693_v61 = vsel %vm691_vm0, %v1934_v60, 0.0  ;;  %1714 = vmatprep.subr.bf16.mxu0 %v1928_v52  ;;  %1791 = vmatprep.subr.bf16.mxu1 %v1928_v52 }
 0x1d7   : > { %v695_v62 = vmul.f32 %v694_v57, %v693_v61 }
 0x1d9   : > { %696 = vst [vmem:[#allocation11] sm:$0x1] %v695_v62  ;;  %1715 = vmatpush3.bf16.msra.mxu0 %v1928_v52  ;;  %1799 = vmatpush3.bf16.msra.mxu1 %v1928_v52 }
 0x1da   : > { %1716 = vmatprep.subr.bf16.mxu0 %v1929_v63  ;;  %1792 = vmatprep.subr.bf16.mxu1 %v1929_v63 }
 0x1dd   : > { %1717 = vmatpush3.bf16.msra.mxu0 %v1929_v63  ;;  %1800 = vmatpush3.bf16.msra.mxu1 %v1929_v63 }
 0x1de   : > { %1718 = vmatprep.subr.bf16.mxu0 %v1930_v0  ;;  %1793 = vmatprep.subr.bf16.mxu1 %v1930_v0 }
 0x1e1   : > { %1719 = vmatpush3.bf16.msra.mxu0 %v1930_v0  ;;  %1801 = vmatpush3.bf16.msra.mxu1 %v1930_v0 }
 0x1e2   : > { %1720 = vmatprep.subr.bf16.mxu0 %v1931_v1  ;;  %1794 = vmatprep.subr.bf16.mxu1 %v1931_v1 }
 0x1e5   : > { %1721 = vmatpush3.bf16.msra.mxu0 %v1931_v1  ;;  %1802 = vmatpush3.bf16.msra.mxu1 %v1931_v1 }
 0x1e6   : > { %1722 = vmatprep.subr.bf16.mxu0 %v1932_v2  ;;  %1795 = vmatprep.subr.bf16.mxu1 %v1932_v2 }
 0x1e9   : > { %1723 = vmatpush3.bf16.msra.mxu0 %v1932_v2  ;;  %1803 = vmatpush3.bf16.msra.mxu1 %v1932_v2 }
 0x1ec   : > { %1725 = vmatmul.mubr.bf16.vlgmr.msra.gmra.mrb[0].mxu0 %v714_v11  ;;  %1733 = vmatmul.mubr.bf16.vlgmr.msra.gmra.mrb[0].mxu1 %v718_v12 }
 0x1ed   : > { %1728 = vmatprep.mubr.bf16.mxu0 %v715_v13  ;;  %1736 = vmatprep.mubr.bf16.mxu1 %v719_v14 }
 0x1f4   : > { %1729 = vmatmul.mubr.bf16.gmra.mrb[4].mxu0 %v716_v19  ;;  %1737 = vmatmul.mubr.bf16.gmra.mrb[4].mxu1 %v720_v20 }
 0x2bf   : > { %v1726_v21 = vpop.f32.mrb[0].mxu0  ;;  %v1734_v22 = vpop.f32.mrb[0].mxu1 }
 0x2c0   : > { %v819_v23 = vpop.f32.mrb[1].mxu0  ;;  %v851_v24 = vpop.f32.mrb[1].mxu1 }
 0x2c1   : > { %v1727_v25 = vpop.f32.mrb[2].mxu0  ;;  %v1735_v26 = vpop.f32.mrb[2].mxu1 }
 0x2c2   : > { %v883_v27 = vpack.c.bf16 %v1727_v25, %v1726_v21  ;;  %v887_v28 = vpack.c.bf16 %v1735_v26, %v1734_v22  ;;  %v822_v29 = vpop.f32.mrb[3].mxu0  ;;  %v854_v30 = vpop.f32.mrb[3].mxu1 }
 0x2c3   : > { %v882_v31 = vpack.c.bf16 %v822_v29, %v819_v23  ;;  %v886_v32 = vpack.c.bf16 %v854_v30, %v851_v24 }
 0x2c4   : > { %891 = vst [vmem:[#allocation3 + $0x8] sm:$0xff] %v883_v27  ;;  %895 = vst [vmem:[#allocation3 + $0x28] sm:$0xff] %v887_v28 }
 0x2c5   : > { %890 = vst [vmem:[#allocation3] sm:$0xff] %v882_v31  ;;  %894 = vst [vmem:[#allocation3 + $0x20] sm:$0xff] %v886_v32 }
 0x2c7   : > { %v1730_v33 = vpop.f32.mrb[4].mxu0  ;;  %v1738_v34 = vpop.f32.mrb[4].mxu1 }
 0x2c8   : > { %v835_v35 = vpop.f32.mrb[5].mxu0  ;;  %v867_v36 = vpop.f32.mrb[5].mxu1 }
 0x2c9   : > { %v1731_v37 = vpop.f32.mrb[6].mxu0  ;;  %v1739_v38 = vpop.f32.mrb[6].mxu1 }
 0x2ca   : > { %v885_v39 = vpack.c.bf16 %v1731_v37, %v1730_v33  ;;  %v889_v40 = vpack.c.bf16 %v1739_v38, %v1738_v34  ;;  %v838_v41 = vpop.f32.mrb[7].mxu0  ;;  %v870_v42 = vpop.f32.mrb[7].mxu1 }
 0x2cb   : > { %v884_v43 = vpack.c.bf16 %v838_v41, %v835_v35  ;;  %v888_v44 = vpack.c.bf16 %v870_v42, %v867_v36 }
 0x2cc   : > { %893 = vst [vmem:[#allocation3 + $0x18] sm:$0xff] %v885_v39  ;;  %897 = vst [vmem:[#allocation3 + $0x38] sm:$0xff] %v889_v40 }
 0x2cd   : > { %892 = vst [vmem:[#allocation3 + $0x10] sm:$0xff] %v884_v43  ;;  %896 = vst [vmem:[#allocation3 + $0x30] sm:$0xff] %v888_v44 }
 0x2ce PF: > { %p1530_p8 = scmp.ne.s32.totalorder %s2133_s21, 1 }
 0x2cf   : > { %v1066_v45 = vld [vmem:[#allocation3] sm:$0xff] (!%p1530_p8)  ;;  %v1067_v46 = vld [vmem:[#allocation3 + $0x8] sm:$0xff] (!%p1530_p8)  ;;  %v1042_v47 = vlaneseq (!%p1530_p8)  ;;  %v2348_v11 = vld [vmem:[#allocation7 + $0x14] sm:$0xf] (!%p1530_p8) }
 0x2d0   : > { %901 = sbr.rel (%p1530_p8) target bundleno = 985 (0x3d9), region = 68  ;;  %1740 = vmatprep.subr.bf16.mxu0 (!%p1530_p8), %v1066_v45  ;;  %1804 = vmatprep.subr.bf16.mxu1 (!%p1530_p8), %v1066_v45  ;;  %v1037_v49 = vld [vmem:[#allocation11] sm:$0x1] (!%p1530_p8)  ;;  %v2326_v54 = vld [vmem:[#allocation7 + $0x8] sm:$0xf] (!%p1530_p8)  ;;  %v923_v13 = vunpack.c.l.bf16 (!%p1530_p8), %v2348_v11 }
 0x2d1   : > { %1741 = vmatpush3.bf16.msra.mxu0 (!%p1530_p8), %v1066_v45  ;;  %1812 = vmatpush3.bf16.msra.mxu1 (!%p1530_p8), %v1066_v45  ;;  %v1043_v48 = vshrl.u32 (!%p1530_p8), %v1042_v47, 7  ;;  %v902_v51 = vld [vmem:[#allocation7] sm:$0xf] (!%p1530_p8)  ;;  %v1038_v52 = vpack.c.bf16 (!%p1530_p8), %v1037_v49, %v1037_v49  ;;  %v920_v55 = vunpack.c.l.bf16 (!%p1530_p8), %v2326_v54  ;;  %v2329_v60 = vld [vmem:[#allocation7 + $0xc] sm:$0xf] (!%p1530_p8) }
 0x2d2   : > { %1742 = vmatprep.subr.bf16.mxu0 (!%p1530_p8), %v1067_v46  ;;  %1805 = vmatprep.subr.bf16.mxu1 (!%p1530_p8), %v1067_v46  ;;  %v918_v56 = vunpack.c.l.bf16 (!%p1530_p8), %v902_v51  ;;  %v2334_v61 = vld [vmem:[%s2529_s3] ss:$0 sm:$0xff] (!%p1530_p8)  ;;  %v903_v62 = vld [vmem:[#allocation7 + $0x4] sm:$0xf] (!%p1530_p8)  ;;  %v921_v3 = vunpack.c.l.bf16 (!%p1530_p8), %v2329_v60  ;;  %v906_v16 = vld [vmem:[#allocation7 + $0x10] sm:$0xf] (!%p1530_p8) }
 0x2d3   : > { %v1044_v53 = vsub.s32 (!%p1530_p8), 0, %v1043_v48  ;;  %v1040_v57 = vpack.i.b16 (!%p1530_p8), %v1038_v52, %v1038_v52  ;;  %v1069_v58 = vld [vmem:[#allocation3 + $0x18] sm:$0xff] (!%p1530_p8)  ;;  %v2336_v63 = vld [vmem:[#allocation7 + $0x20] sm:$0xf] (!%p1530_p8)  ;;  %v911_v0 = vld [vmem:[#allocation7 + $0x24] sm:$0xf] (!%p1530_p8)  ;;  %v943_v1 = vmul.f32 (!%p1530_p8), %v2334_v61, %v920_v55  ;;  %v919_v5 = vunpack.c.l.bf16 (!%p1530_p8), %v903_v62 }
 0x2d4   : > { %v1068_v50 = vld [vmem:[#allocation3 + $0x10] sm:$0xff] (!%p1530_p8)  ;;  %v941_v2 = vmul.f32 (!%p1530_p8), %v2334_v61, %v918_v56  ;;  %v1070_v6 = vld [vmem:[#allocation3 + $0x20] sm:$0xff] (!%p1530_p8)  ;;  %v944_v12 = vmul.f32 (!%p1530_p8), %v2334_v61, %v921_v3  ;;  %v1071_v17 = vld [vmem:[#allocation3 + $0x28] sm:$0xff] (!%p1530_p8)  ;;  %v922_v20 = vunpack.c.l.bf16 (!%p1530_p8), %v906_v16  ;;  %v946_v21 = vmul.f32 (!%p1530_p8), %v2334_v61, %v923_v13 }
 0x2d5   : > { %1743 = vmatpush3.bf16.msra.mxu0 (!%p1530_p8), %v1067_v46  ;;  %1813 = vmatpush3.bf16.msra.mxu1 (!%p1530_p8), %v1067_v46  ;;  %v1045_v59 = vrot.slane (!%p1530_p8), %v1040_v57, %v1044_v53  ;;  %v2352_v18 = vld [vmem:[#allocation7 + $0x1c] sm:$0xf] (!%p1530_p8)  ;;  %v942_v19 = vmul.f32 (!%p1530_p8), %v2334_v61, %v919_v5  ;;  %v2357_v23 = vld [vmem:[#allocation7 + $0x18] sm:$0xf] (!%p1530_p8)  ;;  %v1072_v24 = vld [vmem:[#allocation3 + $0x30] sm:$0xff] (!%p1530_p8)  ;;  %v927_v27 = vunpack.c.l.bf16 (!%p1530_p8), %v911_v0  ;;  %v926_v37 = vunpack.c.l.bf16 (!%p1530_p8), %v2336_v63 }
 0x2d6   : > { %1744 = vmatprep.subr.bf16.mxu0 (!%p1530_p8), %v1068_v50  ;;  %1806 = vmatprep.subr.bf16.mxu1 (!%p1530_p8), %v1068_v50  ;;  %v925_v22 = vunpack.c.l.bf16 (!%p1530_p8), %v2352_v18  ;;  %v945_v25 = vmul.f32 (!%p1530_p8), %v2334_v61, %v922_v20  ;;  %v924_v26 = vunpack.c.l.bf16 (!%p1530_p8), %v2357_v23  ;;  %v912_v29 = vld [vmem:[#allocation7 + $0x28] sm:$0xf] (!%p1530_p8)  ;;  %v913_v30 = vld [vmem:[#allocation7 + $0x2c] sm:$0xf] (!%p1530_p8)  ;;  %v914_v31 = vld [vmem:[#allocation7 + $0x30] sm:$0xf] (!%p1530_p8) }
 0x2d7   : > { %v2341_v4 = vcombine.low %v1045_v59, %v1045_v59  ;;  %961 = vadd.xlane.f32.xlu1 %v943_v1  ;;  %957 = vadd.xlane.f32.xlu0 %v941_v2  ;;  %v915_v32 = vld [vmem:[#allocation7 + $0x34] sm:$0xf]  ;;  %v1073_v33 = vld [vmem:[#allocation3 + $0x38] sm:$0xff]  ;;  %v950_v36 = vmul.f32 %v2334_v61, %v927_v27  ;;  %v929_v45 = vunpack.c.l.bf16 %v913_v30  ;;  %v949_v46 = vmul.f32 %v2334_v61, %v926_v37 }
 0x2d8   : > { %v948_v28 = vmul.f32 %v2334_v61, %v925_v22  ;;  %v947_v35 = vmul.f32 %v2334_v61, %v924_v26  ;;  %v928_v47 = vunpack.c.l.bf16 %v912_v29  ;;  %v916_v52 = vld [vmem:[#allocation7 + $0x38] sm:$0xf]  ;;  %v917_v53 = vld [vmem:[#allocation7 + $0x3c] sm:$0xf]  ;;  %v931_v55 = vunpack.c.l.bf16 %v915_v32 }
 0x2d9   : > { %1745 = vmatpush3.bf16.msra.mxu0 %v1068_v50  ;;  %1814 = vmatpush3.bf16.msra.mxu1 %v1068_v50  ;;  %v1050_v7 = vmul.bf16 %v2341_v4, %v902_v51  ;;  %v1051_v8 = vmul.bf16 %v2341_v4, %v903_v62  ;;  %v1058_v9 = vmul.bf16 %v2341_v4, %v2336_v63  ;;  %v932_v2 = vunpack.c.l.bf16 %v916_v52 }
 0x2da   : > { %1746 = vmatprep.subr.bf16.mxu0 %v1069_v58  ;;  %1807 = vmatprep.subr.bf16.mxu1 %v1069_v58  ;;  %v1059_v10 = vmul.bf16 %v2341_v4, %v911_v0  ;;  %v1052_v34 = vmul.bf16 %v2341_v4, %v2326_v54  ;;  %v1053_v38 = vmul.bf16 %v2341_v4, %v2329_v60  ;;  %v933_v0 = vunpack.c.l.bf16 %v917_v53 }
 0x2db   : > { %v1533_v14 = vcombine.low %v1050_v7, %v1051_v8  ;;  %963 = vadd.xlane.f32.xlu1 %v944_v12  ;;  %959 = vadd.xlane.f32.xlu0 %v942_v19  ;;  %v1060_v39 = vmul.bf16 %v2341_v4, %v912_v29  ;;  %v1061_v40 = vmul.bf16 %v2341_v4, %v913_v30 }
 0x2dc   : > { %v1537_v15 = vcombine.low %v1058_v9, %v1059_v10  ;;  %v1054_v41 = vmul.bf16 %v2341_v4, %v906_v16  ;;  %v1055_v42 = vmul.bf16 %v2341_v4, %v2348_v11  ;;  %v1062_v43 = vmul.bf16 %v2341_v4, %v914_v31 }
 0x2dd   : > { %1747 = vmatpush3.bf16.msra.mxu0 %v1069_v58  ;;  %1815 = vmatpush3.bf16.msra.mxu1 %v1069_v58  ;;  %v1063_v44 = vmul.bf16 %v2341_v4, %v915_v32  ;;  %v1534_v48 = vcombine.low %v1052_v34, %v1053_v38  ;;  %v1538_v49 = vcombine.low %v1060_v39, %v1061_v40  ;;  %v930_v58 = vunpack.c.l.bf16 %v914_v31  ;;  %v2423_v39 = vld [vmem:[%s2530_s4] ss:$0 sm:$0xff] }
 0x2de   : > { %1748 = vmatprep.subr.bf16.mxu0 %v1070_v6  ;;  %1808 = vmatprep.subr.bf16.mxu1 %v1070_v6  ;;  %v1535_v50 = vcombine.low %v1054_v41, %v1055_v42  ;;  %v952_v54 = vmul.f32 %v2334_v61, %v929_v45  ;;  %v1056_v56 = vmul.bf16 %v2341_v4, %v2357_v23 }
 0x2df   : > { %1756 = vmatprep.mubr.bf16.mxu0 %v1533_v14  ;;  %1764 = vmatprep.mubr.bf16.mxu1 %v1537_v15  ;;  %v1539_v51 = vcombine.low %v1062_v43, %v1063_v44  ;;  %v951_v57 = vmul.f32 %v2334_v61, %v928_v47  ;;  %v1057_v59 = vmul.bf16 %v2341_v4, %v2352_v18 }
 0x2e0   : > { %967 = vadd.xlane.f32.xlu1 %v946_v21  ;;  %965 = vadd.xlane.f32.xlu0 %v945_v25  ;;  %v1064_v60 = vmul.bf16 %v2341_v4, %v916_v52  ;;  %v1065_v62 = vmul.bf16 %v2341_v4, %v917_v53  ;;  %v954_v63 = vmul.f32 %v2334_v61, %v931_v55 }
 0x2e1   : > { %1749 = vmatpush3.bf16.msra.mxu0 %v1070_v6  ;;  %1816 = vmatpush3.bf16.msra.mxu1 %v1070_v6  ;;  %v953_v1 = vmul.f32 %v2334_v61, %v930_v58  ;;  %v1536_v3 = vcombine.low %v1056_v56, %v1057_v59  ;;  %v956_v6 = vmul.f32 %v2334_v61, %v933_v0 }
 0x2e2   : > { %1750 = vmatprep.subr.bf16.mxu0 %v1071_v17  ;;  %1809 = vmatprep.subr.bf16.mxu1 %v1071_v17  ;;  %v1540_v5 = vcombine.low %v1064_v60, %v1065_v62  ;;  %v955_v7 = vmul.f32 %v2334_v61, %v932_v2 }
 0x2e4   : > { %971 = vadd.xlane.f32.xlu1 %v948_v28  ;;  %969 = vadd.xlane.f32.xlu0 %v947_v35 }
 0x2e5   : > { %1751 = vmatpush3.bf16.msra.mxu0 %v1071_v17  ;;  %1817 = vmatpush3.bf16.msra.mxu1 %v1071_v17 }
 0x2e6   : > { %1752 = vmatprep.subr.bf16.mxu0 %v1072_v24  ;;  %1810 = vmatprep.subr.bf16.mxu1 %v1072_v24 }
 0x2e8   : > { %975 = vadd.xlane.f32.xlu1 %v950_v36  ;;  %973 = vadd.xlane.f32.xlu0 %v949_v46 }
 0x2e9   : > { %1753 = vmatpush3.bf16.msra.mxu0 %v1072_v24  ;;  %1818 = vmatpush3.bf16.msra.mxu1 %v1072_v24 }
 0x2ea   : > { %1754 = vmatprep.subr.bf16.mxu0 %v1073_v33  ;;  %1811 = vmatprep.subr.bf16.mxu1 %v1073_v33 }
 0x2ec   : > { %979 = vadd.xlane.f32.xlu1 %v952_v54  ;;  %977 = vadd.xlane.f32.xlu0 %v951_v57 }
 0x2ed   : > { %1755 = vmatpush3.bf16.msra.mxu0 %v1073_v33  ;;  %1819 = vmatpush3.bf16.msra.mxu1 %v1073_v33 }
 0x2f0   : > { %1757 = vmatmul.mubr.bf16.vlgmr.msra.gmra.mrb[0].mxu0 %v1534_v48  ;;  %1765 = vmatmul.mubr.bf16.vlgmr.msra.gmra.mrb[0].mxu1 %v1538_v49 }
 0x2f1   : > { %1760 = vmatprep.mubr.bf16.mxu0 %v1535_v50  ;;  %1768 = vmatprep.mubr.bf16.mxu1 %v1539_v51 }
 0x2f2   : > { %983 = vadd.xlane.f32.xlu1 %v954_v63  ;;  %981 = vadd.xlane.f32.xlu0 %v953_v1 }
 0x2f6   : > { %987 = vadd.xlane.f32.xlu1 %v956_v6  ;;  %985 = vadd.xlane.f32.xlu0 %v955_v7 }
 0x2f8   : > { %1761 = vmatmul.mubr.bf16.gmra.mrb[4].mxu0 %v1536_v3  ;;  %1769 = vmatmul.mubr.bf16.gmra.mrb[4].mxu1 %v1540_v5 }
 0x364   : > { %v962_v4 = vpop.xlane.xlu1 %961  ;;  %v958_v8 = vpop.xlane.xlu0 %957 }
 0x365   : > { %1935 = vrcp.f32 %v962_v4  ;;  %vm991_vm1 = vcmp.gt.f32.partialorder %v962_v4, 0.0  ;;  %vm989_vm2 = vcmp.gt.f32.partialorder %v958_v8, 0.0 }
 0x366   : > { %1937 = vrcp.f32 %v958_v8 }
 0x368   : > { %v964_v9 = vpop.xlane.xlu1 %963  ;;  %v960_v10 = vpop.xlane.xlu0 %959 }
 0x369   : > { %1939 = vrcp.f32 %v964_v9  ;;  %vm992_vm3 = vcmp.gt.f32.partialorder %v964_v9, 0.0  ;;  %vm990_vm4 = vcmp.gt.f32.partialorder %v960_v10, 0.0 }
 0x36a   : > { %1941 = vrcp.f32 %v960_v10 }
 0x36d   : > { %v968_v11 = vpop.xlane.xlu1 %967  ;;  %v966_v12 = vpop.xlane.xlu0 %965 }
 0x36e   : > { %1943 = vrcp.f32 %v968_v11  ;;  %vm994_vm5 = vcmp.gt.f32.partialorder %v968_v11, 0.0  ;;  %vm993_vm6 = vcmp.gt.f32.partialorder %v966_v12, 0.0 }
 0x36f   : > { %1945 = vrcp.f32 %v966_v12  ;;  %v1936_v20 = vpop.eup %1935 }
 0x370   : > { %v1938_v21 = vpop.eup %1937  ;;  %v1023_v31 = vsel %vm991_vm1, %v1936_v20, 0.0 }
 0x371   : > { %v972_v13 = vpop.xlane.xlu1 %971  ;;  %v2389_v14 = vpop.xlane.xlu0 %969  ;;  %v1021_v33 = vsel %vm989_vm2, %v1938_v21, 0.0 }
 0x372   : > { %1947 = vrcp.f32 %v972_v13  ;;  %vm996_vm7 = vcmp.gt.f32.partialorder %v972_v13, 0.0  ;;  %vm995_vm8 = vcmp.gt.f32.partialorder %v2389_v14, 0.0 }
 0x373   : > { %1949 = vrcp.f32 %v2389_v14  ;;  %v1940_v23 = vpop.eup %1939 }
 0x374   : > { %v1942_v25 = vpop.eup %1941  ;;  %v1024_v35 = vsel %vm992_vm3, %v1940_v23, 0.0 }
 0x375   : > { %v2391_v15 = vpop.xlane.xlu1 %975  ;;  %v2393_v16 = vpop.xlane.xlu0 %973  ;;  %v1022_v36 = vsel %vm990_vm4, %v1942_v25, 0.0 }
 0x376   : > { %1951 = vrcp.f32 %v2391_v15  ;;  %vm998_vm9 = vcmp.gt.f32.partialorder %v2391_v15, 0.0  ;;  %vm997_vm11 = vcmp.gt.f32.partialorder %v2393_v16, 0.0 }
 0x378   : > { %v1944_v26 = vpop.eup %1943 }
 0x379   : > { %v2395_v17 = vpop.xlane.xlu1 %979  ;;  %v978_v61 = vpop.xlane.xlu0 %977  ;;  %v2416_v37 = vsel %vm994_vm5, %v1944_v26, 0.0 }
 0x37a   : > { %1953 = vrcp.f32 %v978_v61  ;;  %v1946_v27 = vpop.eup %1945  ;;  %vm999_vm10 = vcmp.gt.f32.partialorder %v978_v61, 0.0  ;;  %vm1000_vm12 = vcmp.gt.f32.partialorder %v2395_v17, 0.0 }
 0x37b   : > { %1955 = vrcp.f32 %v2393_v16  ;;  %v1025_v40 = vsel %vm993_vm6, %v1946_v27, 0.0 }
 0x37c   : > { %1957 = vrcp.f32 %v2395_v17  ;;  %v1948_v28 = vpop.eup %1947 }
 0x37d   : > { %v1950_v29 = vpop.eup %1949  ;;  %v2427_v41 = vsel %vm996_vm7, %v1948_v28, 0.0 }
 0x37e   : > { %v1027_v47 = vsel %vm995_vm8, %v1950_v29, 0.0 }
 0x37f   : > { %v2397_v18 = vpop.xlane.xlu1 %983  ;;  %v2399_v19 = vpop.xlane.xlu0 %981 }
 0x380   : > { %1959 = vrcp.f32 %v2397_v18  ;;  %v1952_v30 = vpop.eup %1951  ;;  %vm1002_vm13 = vcmp.gt.f32.partialorder %v2397_v18, 0.0  ;;  %vm1001_vm14 = vcmp.gt.f32.partialorder %v2399_v19, 0.0 }
 0x381   : > { %1961 = vrcp.f32 %v2399_v19  ;;  %v1030_v46 = vsel %vm998_vm9, %v1952_v30, 0.0 }
 0x383   : > { %v2405_v22 = vpop.xlane.xlu1 %987  ;;  %v2408_v24 = vpop.xlane.xlu0 %985 }
 0x384   : > { %1963 = vrcp.f32 %v2405_v22  ;;  %v1954_v32 = vpop.eup %1953  ;;  %vm1004_vm15 = vcmp.gt.f32.partialorder %v2405_v22, 0.0  ;;  %vm1003_vm0 = vcmp.gt.f32.partialorder %v2408_v24, 0.0 }
 0x385   : > { %1965 = vrcp.f32 %v2408_v24  ;;  %v1956_v34 = vpop.eup %1955  ;;  %v1031_v44 = vsel %vm999_vm10, %v1954_v32, 0.0 }
 0x386   : > { %v1958_v38 = vpop.eup %1957  ;;  %v1029_v52 = vsel %vm997_vm11, %v1956_v34, 0.0 }
 0x387   : > { %v1032_v58 = vsel %vm1000_vm12, %v1958_v38, 0.0 }
 0x38a   : > { %v1960_v42 = vpop.eup %1959 }
 0x38b   : > { %v1962_v48 = vpop.eup %1961  ;;  %v1034_v11 = vsel %vm1002_vm13, %v1960_v42, 0.0 }
 0x38c   : > { %v1033_v10 = vsel %vm1001_vm14, %v1962_v48, 0.0 }
 0x38e   : > { %v1964_v54 = vpop.eup %1963 }
 0x38f   : > { %v1966_v60 = vpop.eup %1965  ;;  %v1036_v15 = vsel %vm1004_vm15, %v1964_v54, 0.0 }
 0x390   : > { %v1035_v14 = vsel %vm1003_vm0, %v1966_v60, 0.0 }
 0x3c3   : > { %v1758_v43 = vpop.f32.mrb[0].mxu0  ;;  %v1766_v45 = vpop.f32.mrb[0].mxu1 }
 0x3c4   : > { %v1221_v49 = vmul.f32 %v1758_v43, %v1023_v31  ;;  %v1229_v50 = vmul.f32 %v1766_v45, %v1031_v44  ;;  %v1156_v51 = vpop.f32.mrb[1].mxu0  ;;  %v1188_v53 = vpop.f32.mrb[1].mxu1 }
 0x3c5   : > { %v1219_v55 = vmul.f32 %v1156_v51, %v1021_v33  ;;  %v1227_v56 = vmul.f32 %v1188_v53, %v1029_v52  ;;  %v1759_v57 = vpop.f32.mrb[2].mxu0  ;;  %v1767_v59 = vpop.f32.mrb[2].mxu1 }
 0x3c6   : > { %v1244_v62 = vadd.f32 %v2423_v39, %v1221_v49  ;;  %v1252_v63 = vadd.f32 %v2423_v39, %v1229_v50  ;;  %v1222_v0 = vmul.f32 %v1759_v57, %v1024_v35  ;;  %v1230_v1 = vmul.f32 %v1767_v59, %v1032_v58  ;;  %v1159_v2 = vpop.f32.mrb[3].mxu0  ;;  %v1191_v3 = vpop.f32.mrb[3].mxu1 }
 0x3c7   : > { %v1242_v5 = vadd.f32 %v2423_v39, %v1219_v55  ;;  %v1250_v6 = vadd.f32 %v2423_v39, %v1227_v56  ;;  %v1220_v7 = vmul.f32 %v1159_v2, %v1022_v36  ;;  %v1228_v4 = vmul.f32 %v1191_v3, %v1030_v46 }
 0x3c8   : > { %v1245_v8 = vadd.f32 %v2423_v39, %v1222_v0  ;;  %v1253_v9 = vadd.f32 %v2423_v39, %v1230_v1  ;;  %v1260_v16 = vmax.f32 %v1244_v62, 0.0  ;;  %v1268_v17 = vmax.f32 %v1252_v63, 0.0 }
 0x3c9   : > { %v1243_v12 = vadd.f32 %v2423_v39, %v1220_v7  ;;  %v1251_v13 = vadd.f32 %v2423_v39, %v1228_v4  ;;  %v1258_v21 = vmax.f32 %v1242_v5, 0.0  ;;  %v1266_v19 = vmax.f32 %v1250_v6, 0.0 }
 0x3ca   : > { %v1261_v61 = vmax.f32 %v1245_v8, 0.0  ;;  %v1269_v20 = vmax.f32 %v1253_v9, 0.0 }
 0x3cb   : > { %v1259_v23 = vmax.f32 %v1243_v12, 0.0  ;;  %v1267_v25 = vmax.f32 %v1251_v13, 0.0  ;;  %v1762_v18 = vpop.f32.mrb[4].mxu0  ;;  %v1770_v26 = vpop.f32.mrb[4].mxu1 }
 0x3cc   : > { %v1589_v27 = vpack.c.bf16 %v1261_v61, %v1260_v16  ;;  %v1609_v28 = vpack.c.bf16 %v1269_v20, %v1268_v17  ;;  %v1225_v29 = vmul.f32 %v1762_v18, %v1027_v47  ;;  %v1233_v30 = vmul.f32 %v1770_v26, %v1035_v14  ;;  %v1172_v31 = vpop.f32.mrb[5].mxu0  ;;  %v1204_v24 = vpop.f32.mrb[5].mxu1 }
 0x3cd   : > { %v1584_v32 = vpack.c.bf16 %v1259_v23, %v1258_v21  ;;  %v1604_v33 = vpack.c.bf16 %v1267_v25, %v1266_v19  ;;  %v1223_v22 = vmul.f32 %v1172_v31, %v1025_v40  ;;  %v1231_v34 = vmul.f32 %v1204_v24, %v1033_v10  ;;  %v1763_v35 = vpop.f32.mrb[6].mxu0  ;;  %v1771_v36 = vpop.f32.mrb[6].mxu1 }
 0x3ce   : > { %1621 = vst [vmem:[#allocation10 + $0x8] sm:$0xff] %v1589_v27   ;;  %1625 = vst [vmem:[#allocation10 + $0x28] sm:$0xff] %v1609_v28   ;;  %v1248_v38 = vadd.f32 %v2423_v39, %v1225_v29  ;;  %v1256_v42 = vadd.f32 %v2423_v39, %v1233_v30  ;;  %v1226_v43 = vmul.f32 %v1763_v35, %v2427_v41  ;;  %v1175_v45 = vpop.f32.mrb[7].mxu0  ;;  %v1207_v46 = vpop.f32.mrb[7].mxu1 }
 0x3cf   : > { %v1234_v44 = vmul.f32 %v1771_v36, %v1036_v15  ;;  %1585 = vst [vmem:[#allocation10] sm:$0xff] %v1584_v32   ;;  %1624 = vst [vmem:[#allocation10 + $0x20] sm:$0xff] %v1604_v33   ;;  %v1246_v47 = vadd.f32 %v2423_v39, %v1223_v22  ;;  %v1254_v40 = vadd.f32 %v2423_v39, %v1231_v34 }
 0x3d0   : > { %v1224_v48 = vmul.f32 %v1175_v45, %v2416_v37  ;;  %v1232_v49 = vmul.f32 %v1207_v46, %v1034_v11  ;;  %v1249_v50 = vadd.f32 %v2423_v39, %v1226_v43  ;;  %v1264_v53 = vmax.f32 %v1248_v38, 0.0 }
 0x3d1   : > { %v1257_v51 = vadd.f32 %v2423_v39, %v1234_v44  ;;  %v1272_v54 = vmax.f32 %v1256_v42, 0.0  ;;  %v1262_v57 = vmax.f32 %v1246_v47, 0.0  ;;  %v1270_v58 = vmax.f32 %v1254_v40, 0.0 }
 0x3d2   : > { %v1247_v52 = vadd.f32 %v2423_v39, %v1224_v48  ;;  %v1255_v41 = vadd.f32 %v2423_v39, %v1232_v49  ;;  %v1265_v55 = vmax.f32 %v1249_v50, 0.0 }
 0x3d3   : > { %v1273_v56 = vmax.f32 %v1257_v51, 0.0 }
 0x3d4   : > { %v1263_v59 = vmax.f32 %v1247_v52, 0.0  ;;  %v1271_v60 = vmax.f32 %v1255_v41, 0.0  ;;  %v1599_v62 = vpack.c.bf16 %v1265_v55, %v1264_v53 }
 0x3d5   : > { %v1619_v63 = vpack.c.bf16 %v1273_v56, %v1272_v54 }
 0x3d6   : > { %v1594_v37 = vpack.c.bf16 %v1263_v59, %v1262_v57  ;;  %v1614_v0 = vpack.c.bf16 %v1271_v60, %v1270_v58  ;;  %1623 = vst [vmem:[#allocation10 + $0x18] sm:$0xff] %v1599_v62  }
 0x3d7   : > { %1627 = vst [vmem:[#allocation10 + $0x38] sm:$0xff] %v1619_v63  }
 0x3d8   : > { %1622 = vst [vmem:[#allocation10 + $0x10] sm:$0xff] %v1594_v37   ;;  %1626 = vst [vmem:[#allocation10 + $0x30] sm:$0xff] %v1614_v0  }
 0x3d9 PF: > { %p2469_p11 = scmp.eq.s32.totalorder %s1493_s24, 1  ;;  %s2149_s8 = smov [#allocation10]  }
 0x3da   : > { %s1369_s7 = sshll.u32 %s2149_s8, 4  ;;  %s1370_s7 = int_to_ptr.vmem [resolvable:$true] %s1369_s7 }
 0x3db   : > { %s2051_s10 = scalar_lea.vmem %s1370_s7, 1024  ;;  %s2057_s11 = scalar_lea.vmem %s1370_s7, 2048 }
 0x3dc   : > { %p2052_p12 = scmp.ne.s32.totalorder %s1370_s7, %s2051_s10  ;;  %p2058_p1 = scmp.lt.s32.totalorder %s1370_s7, %s1370_s7 }
 0x3dd   : > { %p2059_p2 = scmp.lt.s32.totalorder %s2057_s11, %s2051_s10 }
 0x3de   : > { %p2053_p13 = pnand %p2052_p12, %p2469_p11 }
 0x3df   : > { %p2060_p5 = por %p2059_p2, %p2058_p1 }
 0x3e0   : > { %p2054_p0 = pneg %p2053_p13 }
 0x3e2   : > { %p2061_p3 = pnand %p2060_p5, %p2054_p0 }
 0x3e4   : > { %2064 = shalt.err (!%p2061_p3)
}
 0x3e5   : > { %s2065_s13 = scalar_lea.hbm %s2531_s5, 1024 }
 0x3e6   : > { %p2066_p4 = scmp.ne.s32.totalorder %s2531_s5, %s2065_s13  ;;  %p2071_p6 = scmp.lt.u32.totalorder %s2065_s13, %s2531_s5 }
 0x3e8   : > { %p2067_p9 = pnand %p2066_p4, %p2469_p11 }
 0x3ea   : > { %p2068_p7 = pneg %p2067_p9 }
 0x3ec   : > { %p2073_p10 = pnand %p2071_p6, %p2068_p7 }
 0x3ee   : > { %2076 = shalt.err (!%p2073_p10)
}
 0x3ef   : > { %s2150_s16 = smov 64   ;;  %s2151_s17 = smov 4  }
 0x3f0   : > { %1833 = dma.vmem_to_hbm [thread:$0]  (%p2469_p11), %s1370_s7, 1024, %s2531_s5, [#allocation6], %s2150_s16, %s2150_s16, %s2151_s17  }
 0x3f1   : > { %s2152_s21 = smov [#allocation11]  }
 0x3f2   : > { %s1383_s18 = sshll.u32 %s2152_s21, 4  ;;  %s1384_s18 = int_to_ptr.vmem [resolvable:$true] %s1383_s18 }
 0x3f3   : > { %s2077_s19 = scalar_lea.vmem %s1384_s18, 16  ;;  %s2083_s20 = scalar_lea.vmem %s1384_s18, 32 }
 0x3f4   : > { %p2078_p8 = scmp.ne.s32.totalorder %s1384_s18, %s2077_s19  ;;  %p2084_p0 = scmp.lt.s32.totalorder %s1384_s18, %s1384_s18 }
 0x3f5   : > { %p2085_p1 = scmp.lt.s32.totalorder %s2083_s20, %s2077_s19 }
 0x3f6   : > { %p2079_p12 = pnand %p2078_p8, %p2469_p11 }
 0x3f7   : > { %p2086_p2 = por %p2085_p1, %p2084_p0 }
 0x3f8   : > { %p2080_p13 = pneg %p2079_p12 }
 0x3fa   : > { %p2087_p5 = pnand %p2086_p2, %p2080_p13 }
 0x3fc   : > { %2090 = shalt.err (!%p2087_p5)
}
 0x3fd   : > { %s2091_s11 = scalar_lea.hbm %s2532_s6, 16 }
 0x3fe   : > { %p2092_p3 = scmp.ne.s32.totalorder %s2532_s6, %s2091_s11  ;;  %p2097_p7 = scmp.lt.u32.totalorder %s2091_s11, %s2532_s6 }
 0x400   : > { %p2093_p4 = pnand %p2092_p3, %p2469_p11 }
 0x402   : > { %p2094_p9 = pneg %p2093_p4 }
 0x404   : > { %p2099_p6 = pnand %p2097_p7, %p2094_p9 }
 0x406   : > { %2102 = shalt.err (!%p2099_p6)
}
 0x407   : > { %1835 = dma.vmem_to_hbm [thread:$0]  (%p2469_p11), %s1384_s18, 16, %s2532_s6, [#allocation12]  }
 0x408   : > { %2124 = dma.done.wait (%p2469_p11), [#allocation12], 16  }
 0x409   : > { %2126 = vsyncadd (%p2469_p11), [#allocation12], 4294967280 }
 0x40a PF: > { %p1866_p10 = scmp.eq.s32.totalorder %s1494_s25, 1  ;;  %p2545_p8 = scmp.ge.s32.totalorder %s2141_s23, 2 }
 0x40c   : > { %p1852_p12 = pnand %p1866_p10, %p2545_p8 }
 0x40e   : > { %2128 = dma.done.wait (!%p1852_p12), [#allocation6], 1024  }
 0x40f   : > { %2130 = vsyncadd (!%p1852_p12), [#allocation6], 4294966272  ;;  %s25_s23 = sadd.s32 1, %s2141_s23   ;;  %s2546_s21 = smov %s2137_s22 }
 0x410   : > { %p22_p13 = scmp.ge.s32.totalorder %s25_s23, 4   ;;  %s2547_s22 = smov %s2549_s26 }
 0x412   :  { %24 = sbr.rel (!%p22_p13) target bundleno = 7 (0x7), region = 118 }
 0x419   :  { %1405 = vsyncpa [#allocation5], 1 }
 0x41a   :  { %1407 = vsyncpa [#allocation5 + $0x1], 1 }
 0x41b   :  { %1408 = vsyncpa [#allocation8], 1 }
 0x41c   :  { %1409 = vsyncpa [#allocation6], 1 }
 0x41d   :  { %1411 = vsyncpa [#allocation6 + $0x1], 1 }
 0x41e   :  { %1412 = vsyncpa [#allocation12], 1 }

</bundles_post_ra>
